<compile_context>
chip_gen: v7x
topology: tpu7x:2x2x1
jax: 0.10.0
libtpu: 0.0.40
codegen_flags: <defaults>
</compile_context>

<pallas_src>
import jax
import jax.numpy as jnp
from jax.experimental import pallas as pl
from jax.experimental.pallas import tpu as pltpu


KERNEL_PARAM_ORDER = ("w1", "b1", "w2", "c2", "w3", "c3", "w4", "c4", "w5", "b5")


# ----------------------------------------------------------------------------- kernel
def generator_kernel(
    x_ref,               # (TB, K1p)          bf16   [x | one_hot(labels) | 0-pad]
    w1_ref, b1_ref,      # (K1p, 64)   bf16,  (1, 64)  f32   (BN1 scale folded)
    w2_ref, c2_ref,      # (64, 128)   bf16,  (1, 128) f32   (BN2 scale / BN1 shift)
    w3_ref, c3_ref,      # (128, 256)  bf16,  (1, 256) f32
    w4_ref, c4_ref,      # (256, 512)  bf16,  (1, 512) f32
    w5_ref, b5_ref,      # (512, 128-padded) bf16, (1, 128-padded) f32
    out_ref,             # (TB, 128-padded)   bf16 (lane-dense; cols >=63 are pad)
):
    # Block 1: fused concat/embedding Linear + bias -> ReLU.
    h = (jnp.dot(x_ref[...], w1_ref[...], preferred_element_type=jnp.float32)
         + b1_ref[...])
    h = jnp.maximum(h, 0.0)

    # Blocks 2-4: Linear (BN scale folded into W, previous BN shift into bias c_k)
    # -> ReLU.  Dropout(0.2) is identity in eval mode.
    for w_ref, c_ref in ((w2_ref, c2_ref), (w3_ref, c3_ref), (w4_ref, c4_ref)):
        h = jnp.dot(h.astype(w_ref.dtype), w_ref[...],
                    preferred_element_type=jnp.float32) + c_ref[...]
        h = jnp.maximum(h, 0.0)

    # Output Linear (+bias, BN4 shift folded in); columns 63..127 are zero pad.
    out = jnp.dot(h.astype(w5_ref.dtype), w5_ref[...],
                  preferred_element_type=jnp.float32) + b5_ref[...]
    out_ref[...] = out.astype(out_ref.dtype)


# ----------------------------------------------------------------------------- params
def make_params(key, random_size, output_size, num_classes, embed_size):
    """Synthetic parameters matching the (fresh, eval-mode) PyTorch module."""
    ks = jax.random.split(key, 8)
    in_dim = random_size + embed_size
    eps = 1e-5

    def lin(k, fan_in, fan_out):
        return (jax.random.normal(k, (fan_in, fan_out), jnp.float32)
                * (1.0 / jnp.sqrt(fan_in)))

    params = {
        "embed": jax.random.normal(ks[0], (num_classes, embed_size), jnp.float32),
        "w1": lin(ks[1], in_dim, 64),
        "b1": jax.random.normal(ks[2], (1, 64), jnp.float32) * 0.01,
        "w2": lin(ks[3], 64, 128),
        "w3": lin(ks[4], 128, 256),
        "w4": lin(ks[5], 256, 512),
        "w5": lin(ks[6], 512, output_size),
        "b5": jax.random.normal(ks[7], (1, output_size), jnp.float32) * 0.01,
    }
    # Eval-mode BatchNorm1d of a fresh module: gamma=1, beta=0, mean=0, var=1.
    bn_scale = 1.0 / jnp.sqrt(1.0 + eps)
    for name, dim in (("1", 64), ("2", 128), ("3", 256), ("4", 512)):
        params[f"s{name}"] = jnp.full((1, dim), bn_scale, jnp.float32)
        params[f"t{name}"] = jnp.zeros((1, dim), jnp.float32)
    return params


def _require_nonneg_scale(s, name):
    """ReLU(h)*s + t == ReLU(h*s) + t only holds for s >= 0 (trained BN can have
    negative gamma, which would make the fold invalid)."""
    try:
        bad = bool(jnp.any(s < 0))
    except jax.errors.ConcretizationTypeError:
        return  # abstract value under tracing; caller owns the precondition
    if bad:
        raise ValueError(
            f"fold_params: BatchNorm scale '{name}' has negative entries; the "
            "ReLU/BatchNorm fold requires a nonnegative scale.")


def fold_params(params, random_size, output_size, *, mxu_dtype=jnp.bfloat16):
    """Fold BN scale/shift, the embedding/concat, and output padding into
    kernel-ready parameters."""
    lane = 128
    out_pad = pl.cdiv(output_size, lane) * lane

    s1, t1 = params["s1"], params["t1"]
    s2, t2 = params["s2"], params["t2"]
    s3, t3 = params["s3"], params["t3"]
    s4, t4 = params["s4"], params["t4"]
    for nm, s in (("s1", s1), ("s2", s2), ("s3", s3), ("s4", s4)):
        _require_nonneg_scale(s, nm)

    w1f = params["w1"] * s1                      # column-scale (ReLU(h)*s == ReLU(h*s))
    b1f = params["b1"] * s1
    w2f = params["w2"] * s2
    c2 = t1 @ w2f                                # previous BN shift -> next-layer bias
    w3f = params["w3"] * s3
    c3 = t2 @ w3f
    w4f = params["w4"] * s4
    c4 = t3 @ w4f
    w5f = params["w5"]
    b5f = params["b5"] + t4 @ params["w5"]

    # Lane-pad output features (63 -> 128) with zero columns; sliced in wrapper.
    w5f = jnp.pad(w5f, ((0, 0), (0, out_pad - output_size)))
    b5f = jnp.pad(b5f, ((0, 0), (0, out_pad - output_size)))

    # Fuse concat + embedding into ONE first-layer matmul:
    #   concat([x, emb]) @ W1 == concat([x, one_hot(labels)]) @ [[W1_x], [embed @ W1_e]]
    # Rows padded to a multiple of 32 (bf16 sublane packing) with zeros.
    w1x = w1f[:random_size]                      # (R, 64)
    e1 = params["embed"] @ w1f[random_size:]     # (num_classes, 64)
    num_classes = e1.shape[0]
    k1 = random_size + num_classes
    k1_pad = pl.cdiv(k1, 32) * 32
    w1cat = jnp.concatenate([w1x, e1], axis=0)
    w1cat = jnp.pad(w1cat, ((0, k1_pad - k1), (0, 0)))

    f32 = jnp.float32
    folded = {
        "w1": w1cat.astype(mxu_dtype), "b1": b1f.astype(f32),
        "w2": w2f.astype(mxu_dtype), "c2": c2.astype(f32),
        "w3": w3f.astype(mxu_dtype), "c3": c3.astype(f32),
        "w4": w4f.astype(mxu_dtype), "c4": c4.astype(f32),
        "w5": w5f.astype(mxu_dtype), "b5": b5f.astype(f32),
    }
    meta = {
        "out_pad": out_pad, "k1_pad": k1_pad, "num_classes": num_classes,
        "random_size": random_size, "output_size": output_size,
    }
    return folded, meta


# ----------------------------------------------------------------------------- tiling
def _choose_block_b(B, *, min_tile=256, max_tile=2048):
    """Pick a 256-aligned batch tile: big enough to amortize per-step overhead and
    fill the 256-wide v6e/v7x MXU, capped at 2048 rows so it stays well inside the
    default scoped VMEM on every generation (incl. v7x's 64 MiB), and keeping >= 2
    grid steps when the batch allows so "parallel" can shard across v7x's 2 TCs."""
    Bp = pl.cdiv(B, min_tile) * min_tile
    if Bp <= min_tile:
        return min_tile, min_tile
    half = pl.cdiv(Bp // 2, min_tile) * min_tile      # aim for >= 2 grid steps
    block_b = max(min_tile, min(max_tile, half))
    Bp = pl.cdiv(Bp, block_b) * block_b
    return block_b, Bp


# ----------------------------------------------------------------------------- wrapper
def generator_forward(x, labels, folded, meta, *, out_dtype=jnp.bfloat16,
                      max_block_b=2048, return_padded=False):
    B = x.shape[0]
    block_b, Bp = _choose_block_b(B, max_tile=max_block_b)

    num_classes = meta["num_classes"]
    k1_pad = meta["k1_pad"]
    out_pad = meta["out_pad"]
    mxu_dtype = folded["w1"].dtype

    # Build the fused first-layer input in one XLA pass:
    #   [x | one_hot(labels) | zero pad] -> (Bp, k1_pad) in the matmul dtype.
    # NOTE: out-of-range labels yield an all-zero one-hot (all-zero embedding)
    # instead of failing like nn.Embedding (benign for in-range inputs).
    one_hot = jax.nn.one_hot(labels, num_classes, dtype=x.dtype)
    xcat = jnp.concatenate([x, one_hot], axis=1)
    xcat = jnp.pad(xcat, ((0, Bp - B), (0, k1_pad - xcat.shape[1]))).astype(mxu_dtype)

    batch_map = lambda i: (i, 0)                  # activations tiled over batch
    const_map = lambda i: (0, 0)                  # weights resident, DMA'd once

    in_specs = [pl.BlockSpec((block_b, k1_pad), batch_map)] + [
        pl.BlockSpec(folded[name].shape, const_map) for name in KERNEL_PARAM_ORDER
    ]

    out = pl.pallas_call(
        generator_kernel,
        out_shape=jax.ShapeDtypeStruct((Bp, out_pad), out_dtype),
        grid=(Bp // block_b,),
        in_specs=in_specs,
        out_specs=pl.BlockSpec((block_b, out_pad), batch_map),
        compiler_params=pltpu.CompilerParams(
            dimension_semantics=("parallel",)),   # shard batch across v7x cores
    )(xcat, *[folded[name] for name in KERNEL_PARAM_ORDER])

    if return_padded:
        # Consumer takes the lane-padded (Bp, 128) slab directly, skipping an
        # extra XLA read+write pass over the output.
        return out
    return out[:B, :meta["output_size"]]


# ----------------------------------------------------------------------------- refs
def reference_forward_unfolded(x, labels, params):
    """Pure-JAX f32 reference of the original (unfolded) eval-mode module math."""
    emb = params["embed"][labels]
    h = jnp.concatenate([x, emb], axis=1)
    h = jnp.maximum(h @ params["w1"] + params["b1"], 0.0) * params["s1"] + params["t1"]
    h = jnp.maximum(h @ params["w2"], 0.0) * params["s2"] + params["t2"]
    h = jnp.maximum(h @ params["w3"], 0.0) * params["s3"] + params["t3"]
    h = jnp.maximum(h @ params["w4"], 0.0) * params["s4"] + params["t4"]
    return h @ params["w5"] + params["b5"]


def reference_forward_folded(x, labels, folded, meta, *, out_dtype=jnp.float32):
    """Pure-JAX reference mirroring the kernel's folded/cast math exactly."""
    f32 = jnp.float32
    mxu_dtype = folded["w1"].dtype
    one_hot = jax.nn.one_hot(labels, meta["num_classes"], dtype=x.dtype)
    xcat = jnp.concatenate([x, one_hot], axis=1)
    xcat = jnp.pad(xcat, ((0, 0), (0, meta["k1_pad"] - xcat.shape[1]))).astype(mxu_dtype)

    def mm(a, w):
        return jnp.dot(a.astype(w.dtype), w, preferred_element_type=f32)

    h = jnp.maximum(mm(xcat, folded["w1"]) + folded["b1"], 0.0)
    h = jnp.maximum(mm(h, folded["w2"]) + folded["c2"], 0.0)
    h = jnp.maximum(mm(h, folded["w3"]) + folded["c3"], 0.0)
    h = jnp.maximum(mm(h, folded["w4"]) + folded["c4"], 0.0)
    out = (mm(h, folded["w5"]) + folded["b5"]).astype(out_dtype)
    return out[:, :meta["output_size"]]


# ----------------------------------------------------------------------------- main
if __name__ == "__main__":
    random_size = 16
    embed_size = 16
    num_classes = 10
    output_size = 63
    batch = 300        # non-multiple of 256: exercises batch padding + a 2-step grid

    key = jax.random.PRNGKey(0)
    k_params, k_x, k_lab = jax.random.split(key, 3)

    params = make_params(k_params, random_size, output_size, num_classes, embed_size)
    x = jax.random.normal(k_x, (batch, random_size), jnp.float32)
    labels = jax.random.randint(k_lab, (batch,), 0, num_classes, jnp.int32)

    folded_bf16, meta = fold_params(params, random_size, output_size,
                                    mxu_dtype=jnp.bfloat16)

    out = generator_forward(x, labels, folded_bf16, meta, out_dtype=jnp.bfloat16)
    out = jax.block_until_ready(out)
    assert out.shape == (batch, output_size)
    assert out.dtype == jnp.bfloat16

    # 1) BN/embedding/concat/padding folding is exact (f32 folded vs unfolded math).
    folded_f32, meta_f32 = fold_params(params, random_size, output_size,
                                       mxu_dtype=jnp.float32)
    ref_unfolded = reference_forward_unfolded(x, labels, params)
    ref_folded_f32 = reference_forward_folded(x, labels, folded_f32, meta_f32,
                                              out_dtype=jnp.float32)
    assert jnp.allclose(ref_folded_f32, ref_unfolded, atol=1e-4, rtol=1e-4), \
        "param folding mismatch"

    # 2) kernel matches the bf16-matched reference (same operands, f32 accumulation,
    #    bf16 output); tolerance covers one bf16 ulp of output rounding.
    ref_bf16 = reference_forward_folded(x, labels, folded_bf16, meta,
                                        out_dtype=jnp.bfloat16)
    max_err = jnp.max(jnp.abs(out.astype(jnp.float32) - ref_bf16.astype(jnp.float32)))
    assert float(max_err) < 2e-2, f"kernel mismatch vs reference (max abs err {max_err})"

    print("KERNEL_OK")
</pallas_src>

<mosaic_0001>
module attributes {stable_mosaic.version = 11 : i64} {
  func.func @generator_kernel(%arg0: i32, %arg1: memref<256x32xbf16, #tpu.memory_space<vmem>>, %arg2: memref<32x64xbf16, #tpu.memory_space<vmem>>, %arg3: memref<1x64xf32, #tpu.memory_space<vmem>>, %arg4: memref<64x128xbf16, #tpu.memory_space<vmem>>, %arg5: memref<1x128xf32, #tpu.memory_space<vmem>>, %arg6: memref<128x256xbf16, #tpu.memory_space<vmem>>, %arg7: memref<1x256xf32, #tpu.memory_space<vmem>>, %arg8: memref<256x512xbf16, #tpu.memory_space<vmem>>, %arg9: memref<1x512xf32, #tpu.memory_space<vmem>>, %arg10: memref<512x128xbf16, #tpu.memory_space<vmem>>, %arg11: memref<1x128xf32, #tpu.memory_space<vmem>>, %arg12: memref<256x128xbf16, #tpu.memory_space<vmem>>) attributes {dimension_semantics = [#tpu.dimension_semantics<parallel>], iteration_bounds = array<i64: 2>, scalar_prefetch = 0 : i64, scratch_operands = 0 : i64, tpu.core_type = #tpu.core_type<tc>, window_params = [{transform_indices = @transform_0, window_bounds = array<i64: 256, 32>}, {pipeline_mode = #tpu.pipeline_mode<synchronous>, transform_indices = @transform_1, window_bounds = array<i64: 32, 64>}, {pipeline_mode = #tpu.pipeline_mode<synchronous>, transform_indices = @transform_2, window_bounds = array<i64: 1, 64>}, {pipeline_mode = #tpu.pipeline_mode<synchronous>, transform_indices = @transform_3, window_bounds = array<i64: 64, 128>}, {pipeline_mode = #tpu.pipeline_mode<synchronous>, transform_indices = @transform_4, window_bounds = array<i64: 1, 128>}, {pipeline_mode = #tpu.pipeline_mode<synchronous>, transform_indices = @transform_5, window_bounds = array<i64: 128, 256>}, {pipeline_mode = #tpu.pipeline_mode<synchronous>, transform_indices = @transform_6, window_bounds = array<i64: 1, 256>}, {pipeline_mode = #tpu.pipeline_mode<synchronous>, transform_indices = @transform_7, window_bounds = array<i64: 256, 512>}, {pipeline_mode = #tpu.pipeline_mode<synchronous>, transform_indices = @transform_8, window_bounds = array<i64: 1, 512>}, {pipeline_mode = #tpu.pipeline_mode<synchronous>, transform_indices = @transform_9, window_bounds = array<i64: 512, 128>}, {pipeline_mode = #tpu.pipeline_mode<synchronous>, transform_indices = @transform_10, window_bounds = array<i64: 1, 128>}, {transform_indices = @transform_11, window_bounds = array<i64: 256, 128>}]} {
    %c0 = arith.constant 0 : index
    %c0_0 = arith.constant 0 : index
    %0 = vector.load %arg1[%c0, %c0_0] : memref<256x32xbf16, #tpu.memory_space<vmem>>, vector<256x32xbf16>
    %c0_1 = arith.constant 0 : index
    %c0_2 = arith.constant 0 : index
    %1 = vector.load %arg2[%c0_1, %c0_2] : memref<32x64xbf16, #tpu.memory_space<vmem>>, vector<32x64xbf16>
    %cst = arith.constant dense<0.000000e+00> : vector<256x64xf32>
    %2 = tpu.matmul %0, %1, %cst {dimension_numbers = #tpu.dot_dimension_numbers<[1], [0], [0], [1], [0, 0, 1, 1], [], []>} : vector<256x32xbf16>, vector<32x64xbf16>, vector<256x64xf32> -> vector<256x64xf32>
    %c0_3 = arith.constant 0 : index
    %c0_4 = arith.constant 0 : index
    %3 = vector.load %arg3[%c0_3, %c0_4] : memref<1x64xf32, #tpu.memory_space<vmem>>, vector<1x64xf32>
    %4 = vector.broadcast %3 : vector<1x64xf32> to vector<256x64xf32>
    %5 = arith.addf %2, %4 : vector<256x64xf32>
    %cst_5 = arith.constant 0.000000e+00 : f32
    %6 = vector.broadcast %cst_5 : f32 to vector<256x64xf32>
    %7 = arith.maximumf %5, %6 : vector<256x64xf32>
    %8 = arith.truncf %7 : vector<256x64xf32> to vector<256x64xbf16>
    %c0_6 = arith.constant 0 : index
    %c0_7 = arith.constant 0 : index
    %9 = vector.load %arg4[%c0_6, %c0_7] : memref<64x128xbf16, #tpu.memory_space<vmem>>, vector<64x128xbf16>
    %cst_8 = arith.constant dense<0.000000e+00> : vector<256x128xf32>
    %10 = tpu.matmul %8, %9, %cst_8 {dimension_numbers = #tpu.dot_dimension_numbers<[1], [0], [0], [1], [0, 0, 1, 1], [], []>} : vector<256x64xbf16>, vector<64x128xbf16>, vector<256x128xf32> -> vector<256x128xf32>
    %c0_9 = arith.constant 0 : index
    %c0_10 = arith.constant 0 : index
    %11 = vector.load %arg5[%c0_9, %c0_10] : memref<1x128xf32, #tpu.memory_space<vmem>>, vector<1x128xf32>
    %12 = vector.broadcast %11 : vector<1x128xf32> to vector<256x128xf32>
    %13 = arith.addf %10, %12 : vector<256x128xf32>
    %cst_11 = arith.constant 0.000000e+00 : f32
    %14 = vector.broadcast %cst_11 : f32 to vector<256x128xf32>
    %15 = arith.maximumf %13, %14 : vector<256x128xf32>
    %16 = arith.truncf %15 : vector<256x128xf32> to vector<256x128xbf16>
    %c0_12 = arith.constant 0 : index
    %c0_13 = arith.constant 0 : index
    %17 = vector.load %arg6[%c0_12, %c0_13] : memref<128x256xbf16, #tpu.memory_space<vmem>>, vector<128x256xbf16>
    %cst_14 = arith.constant dense<0.000000e+00> : vector<256x256xf32>
    %18 = tpu.matmul %16, %17, %cst_14 {dimension_numbers = #tpu.dot_dimension_numbers<[1], [0], [0], [1], [0, 0, 1, 1], [], []>} : vector<256x128xbf16>, vector<128x256xbf16>, vector<256x256xf32> -> vector<256x256xf32>
    %c0_15 = arith.constant 0 : index
    %c0_16 = arith.constant 0 : index
    %19 = vector.load %arg7[%c0_15, %c0_16] : memref<1x256xf32, #tpu.memory_space<vmem>>, vector<1x256xf32>
    %20 = vector.broadcast %19 : vector<1x256xf32> to vector<256x256xf32>
    %21 = arith.addf %18, %20 : vector<256x256xf32>
    %cst_17 = arith.constant 0.000000e+00 : f32
    %22 = vector.broadcast %cst_17 : f32 to vector<256x256xf32>
    %23 = arith.maximumf %21, %22 : vector<256x256xf32>
    %24 = arith.truncf %23 : vector<256x256xf32> to vector<256x256xbf16>
    %c0_18 = arith.constant 0 : index
    %c0_19 = arith.constant 0 : index
    %25 = vector.load %arg8[%c0_18, %c0_19] : memref<256x512xbf16, #tpu.memory_space<vmem>>, vector<256x512xbf16>
    %cst_20 = arith.constant dense<0.000000e+00> : vector<256x512xf32>
    %26 = tpu.matmul %24, %25, %cst_20 {dimension_numbers = #tpu.dot_dimension_numbers<[1], [0], [0], [1], [0, 0, 1, 1], [], []>} : vector<256x256xbf16>, vector<256x512xbf16>, vector<256x512xf32> -> vector<256x512xf32>
    %c0_21 = arith.constant 0 : index
    %c0_22 = arith.constant 0 : index
    %27 = vector.load %arg9[%c0_21, %c0_22] : memref<1x512xf32, #tpu.memory_space<vmem>>, vector<1x512xf32>
    %28 = vector.broadcast %27 : vector<1x512xf32> to vector<256x512xf32>
    %29 = arith.addf %26, %28 : vector<256x512xf32>
    %cst_23 = arith.constant 0.000000e+00 : f32
    %30 = vector.broadcast %cst_23 : f32 to vector<256x512xf32>
    %31 = arith.maximumf %29, %30 : vector<256x512xf32>
    %32 = arith.truncf %31 : vector<256x512xf32> to vector<256x512xbf16>
    %c0_24 = arith.constant 0 : index
    %c0_25 = arith.constant 0 : index
    %33 = vector.load %arg10[%c0_24, %c0_25] : memref<512x128xbf16, #tpu.memory_space<vmem>>, vector<512x128xbf16>
    %cst_26 = arith.constant dense<0.000000e+00> : vector<256x128xf32>
    %34 = tpu.matmul %32, %33, %cst_26 {dimension_numbers = #tpu.dot_dimension_numbers<[1], [0], [0], [1], [0, 0, 1, 1], [], []>} : vector<256x512xbf16>, vector<512x128xbf16>, vector<256x128xf32> -> vector<256x128xf32>
    %c0_27 = arith.constant 0 : index
    %c0_28 = arith.constant 0 : index
    %35 = vector.load %arg11[%c0_27, %c0_28] : memref<1x128xf32, #tpu.memory_space<vmem>>, vector<1x128xf32>
    %36 = vector.broadcast %35 : vector<1x128xf32> to vector<256x128xf32>
    %37 = arith.addf %34, %36 : vector<256x128xf32>
    %38 = arith.truncf %37 : vector<256x128xf32> to vector<256x128xbf16>
    %c0_29 = arith.constant 0 : index
    %c0_30 = arith.constant 0 : index
    %39 = vector.load %arg12[%c0_29, %c0_30] : memref<256x128xbf16, #tpu.memory_space<vmem>>, vector<256x128xbf16>
    tpu.vector_store %arg12[%c0_29, %c0_30], %38 {strides = array<i32>} : memref<256x128xbf16, #tpu.memory_space<vmem>>, vector<256x128xbf16>,
    return
  }
  func.func @transform_0(%arg0: i32) -> (i32, i32) {
    %c0_i32 = arith.constant 0 : i32
    %c0_i32_0 = arith.constant 0 : i32
    return %arg0, %c0_i32 : i32, i32
  }
  func.func @transform_1(%arg0: i32) -> (i32, i32) {
    %c0_i32 = arith.constant 0 : i32
    %c0_i32_0 = arith.constant 0 : i32
    %c0_i32_1 = arith.constant 0 : i32
    return %c0_i32, %c0_i32_0 : i32, i32
  }
  func.func @transform_2(%arg0: i32) -> (i32, i32) {
    %c0_i32 = arith.constant 0 : i32
    %c0_i32_0 = arith.constant 0 : i32
    %c0_i32_1 = arith.constant 0 : i32
    return %c0_i32, %c0_i32_0 : i32, i32
  }
  func.func @transform_3(%arg0: i32) -> (i32, i32) {
    %c0_i32 = arith.constant 0 : i32
    %c0_i32_0 = arith.constant 0 : i32
    %c0_i32_1 = arith.constant 0 : i32
    return %c0_i32, %c0_i32_0 : i32, i32
  }
  func.func @transform_4(%arg0: i32) -> (i32, i32) {
    %c0_i32 = arith.constant 0 : i32
    %c0_i32_0 = arith.constant 0 : i32
    %c0_i32_1 = arith.constant 0 : i32
    return %c0_i32, %c0_i32_0 : i32, i32
  }
  func.func @transform_5(%arg0: i32) -> (i32, i32) {
    %c0_i32 = arith.constant 0 : i32
    %c0_i32_0 = arith.constant 0 : i32
    %c0_i32_1 = arith.constant 0 : i32
    return %c0_i32, %c0_i32_0 : i32, i32
  }
  func.func @transform_6(%arg0: i32) -> (i32, i32) {
    %c0_i32 = arith.constant 0 : i32
    %c0_i32_0 = arith.constant 0 : i32
    %c0_i32_1 = arith.constant 0 : i32
    return %c0_i32, %c0_i32_0 : i32, i32
  }
  func.func @transform_7(%arg0: i32) -> (i32, i32) {
    %c0_i32 = arith.constant 0 : i32
    %c0_i32_0 = arith.constant 0 : i32
    %c0_i32_1 = arith.constant 0 : i32
    return %c0_i32, %c0_i32_0 : i32, i32
  }
  func.func @transform_8(%arg0: i32) -> (i32, i32) {
    %c0_i32 = arith.constant 0 : i32
    %c0_i32_0 = arith.constant 0 : i32
    %c0_i32_1 = arith.constant 0 : i32
    return %c0_i32, %c0_i32_0 : i32, i32
  }
  func.func @transform_9(%arg0: i32) -> (i32, i32) {
    %c0_i32 = arith.constant 0 : i32
    %c0_i32_0 = arith.constant 0 : i32
    %c0_i32_1 = arith.constant 0 : i32
    return %c0_i32, %c0_i32_0 : i32, i32
  }
  func.func @transform_10(%arg0: i32) -> (i32, i32) {
    %c0_i32 = arith.constant 0 : i32
    %c0_i32_0 = arith.constant 0 : i32
    %c0_i32_1 = arith.constant 0 : i32
    return %c0_i32, %c0_i32_0 : i32, i32
  }
  func.func @transform_11(%arg0: i32) -> (i32, i32) {
    %c0_i32 = arith.constant 0 : i32
    %c0_i32_0 = arith.constant 0 : i32
    return %arg0, %c0_i32 : i32, i32
  }
}

</mosaic_0001>

<bundles_post_ra>
// kernel: tpu_custom_call.1
= control target key start
LH: loop header
LB: loop body
LE: loop exit
PB: predicated region body
PF: predicated region fallthrough
CT: control target
= control target key end

     0   :  { %16 = vsyncpa [#allocation3], 0  ;;  %s5263_s0 = inlined_call_operand.vmem [shape: bf16[512,32], index: 0, kind: input, shape index: {}]   ;;  %s5264_s1 = inlined_call_operand.vmem [shape: bf16[32,64], index: 1, kind: input, shape index: {}]   ;;  %s5265_s2 = inlined_call_operand.vmem [shape: f32[1,64], index: 2, kind: input, shape index: {}]   ;;  %s5266_s3 = inlined_call_operand.vmem [shape: bf16[64,128], index: 3, kind: input, shape index: {}]   ;;  %s5267_s4 = inlined_call_operand.vmem [shape: f32[1,128], index: 4, kind: input, shape index: {}]   ;;  %s5268_s5 = inlined_call_operand.hbm [shape: bf16[128,256], index: 5, kind: input, shape index: {}]   ;;  %s5269_s6 = inlined_call_operand.vmem [shape: f32[1,256], index: 6, kind: input, shape index: {}]   ;;  %s5270_s7 = inlined_call_operand.hbm [shape: bf16[256,512], index: 7, kind: input, shape index: {}]   ;;  %s5271_s8 = inlined_call_operand.vmem [shape: f32[1,512], index: 8, kind: input, shape index: {}]   ;;  %s5272_s9 = inlined_call_operand.vmem [shape: bf16[512,128], index: 9, kind: input, shape index: {}]   ;;  %s5273_s10 = inlined_call_operand.vmem [shape: f32[1,128], index: 10, kind: input, shape index: {}]   ;;  %s5274_s11 = inlined_call_operand.hbm [shape: bf16[512,128], index: 11, kind: output, shape index: {}]  }
   0x1   :  { %17 = vsyncpa [#allocation6], 0 }
   0x2   :  { %18 = vsyncpa [#allocation4], 0 }
   0x3   :  { %20 = vsyncpa [#allocation4 + $0x1], 0  ;;  %s4471_s17 = smov 0   ;;  %s4473_s18 = smov 0  }
   0x4   :  { %s4475_s19 = smov 0   ;;  %s4477_s20 = smov 0  }
   0x5 LB: > { %5283 = sst [smem:[#allocation11_spill]] %s4387_s17  ;;  %s4492_s21 = sadd.s32 4294967295, %s4399_s20   ;;  %s4399_s20 = sphi %s4477_s20, %s5301_s20   ;;  %s4395_s19 = sphi %s4475_s19, %s5303_s19   ;;  %s4391_s18 = sphi %s4473_s18, %s5305_s18   ;;  %s4387_s17 = sphi %s4471_s17, %s5304_s17  }
   0x6   : > { %5284 = sst [smem:[#allocation12_spill]] %s4395_s19  ;;  %s3333_s22 = sadd.s32 4294967294, %s4399_s20  }
   0x7   : > { %s4496_s23 = sadd.s32 1, %s4399_s20   ;;  %s269_s24 = sadd.s32 1, %s4395_s19 }
   0x8   : > { %5285 = sst [smem:[#allocation13_spill]] %s4496_s23  ;;  %s266_s25 = ssub.s32 %s4399_s20, %s4496_s23 }
   0x9   : > { %p279_p0 = scmp.ne.s32.totalorder %s4395_s19, %s4391_s18  ;;  %p267_p1 = scmp.eq.s32.totalorder %s266_s25, 0 }
   0xa   : > { %p280_p2 = scmp.eq.s32.totalorder %s4492_s21, 1  ;;  %p285_p3 = scmp.ne.s32.totalorder %s4391_s18, %s4387_s17 }
   0xb   : > { %p286_p4 = scmp.eq.s32.totalorder %s3333_s22, 1  ;;  %p3334_p7 = scmp.ge.s32.totalorder %s4399_s20, 1 }
   0xc   : > { %s4507_s26 = scalar_select %p267_p1, %s4395_s19, %s269_s24  }
   0xd   : > { %p4509_p5 = por %p280_p2, %p279_p0  ;;  %p4513_p6 = por %p286_p4, %p285_p3 }
   0xe   : > { %5286 = sst [smem:[#allocation14_spill]] %s4507_s26  ;;  %p293_p8 = scmp.lt.s32.totalorder %s4399_s20, 3 }
   0xf   : > { %s5287_s27 = scalar_select %p4509_p5, 1, 0 }
  0x10   : > { %s5288_s28 = scalar_select %p4513_p6, 1, 0 }
  0x11   : > { %p5276_p9 = scmp.eq.s32.totalorder %s4492_s21, 0  ;;  %p4520_p10 = pnand %p3334_p7, %p293_p8 }
  0x12   : > { %5289 = sst [smem:[#allocation15_spill]] %s5288_s28  ;;  %s4401_s30 = smov [#allocation2]  }
  0x13   : > { %s5290_s29 = scalar_select %p4520_p10, 1, 0 }
  0x14   : > { %s317_s12 = sshll.u32 %s4401_s30, 4  ;;  %p4042_p11 = pneg %p4520_p10  ;;  %s318_s12 = int_to_ptr.vmem [resolvable:$true] %s317_s12 }
  0x15   : > { %s4402_s14 = smov [#allocation5]   ;;  %s4273_s24 = scalar_lea.hbm %s5268_s5, 2048 }
  0x16   : > { %p4528_p12 = pnand %p5276_p9, %p4042_p11  ;;  %s333_s15 = sshll.u32 %s4402_s14, 4  ;;  %s4532_s15 = int_to_ptr.vmem [resolvable:$true] %s333_s15 }
  0x17   : > { %p4274_p13 = scmp.ne.s32.totalorder %s5268_s5, %s4273_s24  ;;  %p4280_p3 = scmp.lt.u32.totalorder %s4273_s24, %s5268_s5 }
  0x18   : > { %p4275_p0 = pneg %p4528_p12 }
  0x1a   : > { %p4276_p1 = pnand %p4275_p0, %p4274_p13 }
  0x1c   : > { %p4277_p2 = pneg %p4276_p1 }
  0x1e   : > { %p4282_p4 = pnand %p4280_p3, %p4277_p2 }
  0x20   : > { %4285 = shalt.err (!%p4282_p4)
}
  0x21   : > { %s4286_s14 = scalar_lea.vmem %s318_s12, 2048  ;;  %p4294_p9 = scmp.lt.s32.totalorder %s318_s12, %s318_s12 }
  0x22   : > { %p4287_p7 = scmp.ne.s32.totalorder %s318_s12, %s4286_s14  ;;  %p4295_p6 = scmp.lt.s32.totalorder %s4286_s14, %s4286_s14 }
  0x24   : > { %p4289_p8 = pnand %p4287_p7, %p4275_p0  ;;  %p4296_p5 = por %p4295_p6, %p4294_p9 }
  0x26   : > { %p4290_p11 = pneg %p4289_p8 }
  0x28   : > { %p4297_p10 = pnand %p4296_p5, %p4290_p11 }
  0x2a   : > { %4300 = shalt.err (!%p4297_p10)
}
  0x2b   : > { %s4403_s16 = smov 128   ;;  %s4404_s22 = smov 8  }
  0x2c   : > { %4045 = dma.hbm_to_vmem [thread:$0]  (!%p4528_p12), %s5268_s5, 2048, %s318_s12, [#allocation3], %s4403_s16, %s4403_s16, %s4404_s22  }
  0x2d   : > { %s4301_s30 = scalar_lea.hbm %s5270_s7, 8192 }
  0x2e   : > { %p4302_p13 = scmp.ne.s32.totalorder %s5270_s7, %s4301_s30  ;;  %p4308_p9 = scmp.lt.u32.totalorder %s4301_s30, %s5270_s7 }
  0x30   : > { %p4304_p5 = pnand %p4302_p13, %p4275_p0 }
  0x32   : > { %p4305_p6 = pneg %p4304_p5 }
  0x34   : > { %p4310_p10 = pnand %p4308_p9, %p4305_p6 }
  0x36   : > { %4313 = shalt.err (!%p4310_p10)
}
  0x37   : > { %s4314_s12 = scalar_lea.vmem %s4532_s15, 8192  ;;  %p4322_p4 = scmp.lt.s32.totalorder %s4532_s15, %s4532_s15 }
  0x38   : > { %p4315_p1 = scmp.ne.s32.totalorder %s4532_s15, %s4314_s12  ;;  %p4323_p7 = scmp.lt.s32.totalorder %s4314_s12, %s4314_s12 }
  0x3a   : > { %p4317_p2 = pnand %p4315_p1, %p4275_p0  ;;  %p4324_p8 = por %p4323_p7, %p4322_p4 }
  0x3c   : > { %p4318_p3 = pneg %p4317_p2 }
  0x3e   : > { %p4325_p11 = pnand %p4324_p8, %p4318_p3 }
  0x40   : > { %4328 = shalt.err (!%p4325_p11)
}
  0x41   : > { %s4405_s17 = smov 256   ;;  %s4406_s23 = smov 16  }
  0x42   : > { %4048 = dma.hbm_to_vmem [thread:$0]  (!%p4528_p12), %s5270_s7, 8192, %s4532_s15, [#allocation6], %s4405_s17, %s4405_s17, %s4406_s23  }
  0x43   : > { %p5292_p13 = scmp.ne.s32.totalorder %s5290_s29, 0 }
  0x44   : > { %p5293_p0 = scmp.eq.s32.totalorder (!%p5292_p13), %s4492_s21, 0 }
  0x45   : > { %367 = sbr.rel (%p5292_p13) target bundleno = 1334 (0x536), region = 64 }
  0x4c   : > { %4374 = dma.done.wait (%p5293_p0), [#allocation3], 2048   ;;  %p5294_p5 = pmov %p5293_p0 }
  0x4d   : > { %p5295_p6 = pmov %p5293_p0 }
  0x4e   : > { %4376 = vsyncadd (%p5294_p5), [#allocation3], 4294965248 }
  0x4f   : > { %4378 = dma.done.wait (%p5295_p6), [#allocation6], 8192   ;;  %p5296_p9 = pmov %p5293_p0 }
  0x50   : > { %s3342_s13 = sshll.u32 %s4492_s21, 5  ;;  %v4099_v0 = vld [vmem:[%s5264_s1] sm:$0xff]   ;;  %v4100_v1 = vld [vmem:[%s5264_s1 + $0x8] sm:$0xff]   ;;  %vm554_vm0 = vcmask 261120   ;;  %v4119_v20 = vld [vmem:[%s5266_s3 + $0x10] sm:$0xff]   ;;  %vm851_vm1 = vcmask 523264  }
  0x51   : > { %4380 = vsyncadd (%p5296_p9), [#allocation6], 4294959104  ;;  %p412_p10 = scmp.lt.s32.totalorder %s3342_s13, 63  ;;  %3940 = vmatprep.subr.bf16.mxu0 %v4099_v0  ;;  %v4117_v7 = vld [vmem:[%s5266_s3] sm:$0xff]   ;;  %v4118_v8 = vld [vmem:[%s5266_s3 + $0x8] sm:$0xff]   ;;  %p5297_p1 = scmp.ne.s32.totalorder %s5287_s27, 0 }
  0x52   : > { %3941 = vmatpush3.bf16.msra.mxu0 %v4099_v0  ;;  %3976 = vmatprep.subr.bf16.mxu1 %v4117_v7  ;;  %v4120_v21 = vld [vmem:[%s5266_s3 + $0x18] sm:$0xff]   ;;  %v4121_v22 = vld [vmem:[#allocation2] ss:$8 sps:$4 sm:$0xff]   ;;  %v4123_v23 = vld [vmem:[#allocation2 + $0x4] ss:$8 sps:$4 sm:$0xff]  }
  0x53   : > { %s5307_s13 = smov (!%p412_p10, %s3342_s13), 63  ;;  %3942 = vmatprep.subr.bf16.mxu0 %v4100_v1  ;;  %3977 = vmatpush3.bf16.msra.mxu1 %v4117_v7  ;;  %v4126_v24 = vld [vmem:[#allocation2 + $0x14] ss:$8 sps:$4 sm:$0xff]   ;;  %v4124_v25 = vld [vmem:[#allocation2 + $0x10] ss:$8 sps:$4 sm:$0xff]  }
  0x54   : > { %s3343_s15 = sshll.u32 %s5307_s13, 2  ;;  %3978 = vmatprep.subr.bf16.mxu1 %v4118_v8  ;;  %v4129_v26 = vld [vmem:[#allocation2 + $0x24] ss:$8 sps:$4 sm:$0xff]   ;;  %v4647_v27 = vld [vmem:[#allocation2 + $0x20] ss:$8 sps:$4 sm:$0xff]  }
  0x55   : > { %s4595_s19 = scalar_lea.vmem %s5263_s0, %s3343_s15  ;;  %v4649_v28 = vld [vmem:[#allocation2 + $0x34] ss:$8 sps:$4 sm:$0xff]   ;;  %v4652_v29 = vld [vmem:[#allocation2 + $0x30] ss:$8 sps:$4 sm:$0xff]   ;;  %v4655_v30 = vld [vmem:[#allocation2 + $0x44] ss:$8 sps:$4 sm:$0xff]  }
  0x56   : > { %v4101_v2 = vld [vmem:[%s4595_s19] sm:$0xff]   ;;  %v4102_v3 = vld [vmem:[%s4595_s19 + $0x8] sm:$0xff]   ;;  %3943 = vmatpush3.bf16.msra.mxu0 %v4100_v1  ;;  %v4103_v4 = vld [vmem:[%s4595_s19 + $0x10] sm:$0xff]   ;;  %s408_s15 = sand.u32 1, %s4391_s18  }
  0x57   : > { %3944 = vmatprep.mubr.msk.bf16.mxu0 %vm554_vm0, %v4101_v2  ;;  %v4104_v5 = vld [vmem:[%s4595_s19 + $0x18] sm:$0xff]   ;;  %v4105_v6 = vld [vmem:[%s4595_s19 + $0x20] sm:$0xff]   ;;  %v4106_v9 = vld [vmem:[%s4595_s19 + $0x28] sm:$0xff]   ;;  %3979 = vmatpush3.bf16.msra.mxu1 %v4118_v8  ;;  %s3341_s22 = sshll.u32 %s408_s15, 7  ;;  %s5222_s14 = scalar_lea.sflag [#allocation4], %s408_s15 }
  0x58   : > { %v4107_v10 = vld [vmem:[%s4595_s19 + $0x30] sm:$0xff]   ;;  %v4108_v11 = vld [vmem:[%s4595_s19 + $0x38] sm:$0xff]   ;;  %v4109_v12 = vld [vmem:[%s4595_s19 + $0x40] sm:$0xff]   ;;  %3980 = vmatprep.subr.bf16.mxu1 %v4119_v20  ;;  %1217 = vmatprep.subr.bf16.mxu0 %v4123_v23  ;;  %s5163_s29 = scalar_lea.vmem [#allocation7], %s3341_s22 }
  0x59   : > { %3945 = vmatmul.mubr.msk.bf16.vlgmr.msra.gmra.mrb[0].mxu0 %vm554_vm0, %v4102_v3  ;;  %v4110_v13 = vld [vmem:[%s4595_s19 + $0x48] sm:$0xff]   ;;  %v4111_v14 = vld [vmem:[%s4595_s19 + $0x50] sm:$0xff]   ;;  %v4112_v15 = vld [vmem:[%s4595_s19 + $0x58] sm:$0xff]   ;;  %s3249_s26 = sshll.u32 %s5163_s29, 4  ;;  %s5217_s26 = int_to_ptr.vmem [resolvable:$true] %s3249_s26 }
  0x5a   : > { %3948 = vmatprep.mubr.msk.bf16.mxu0 %vm554_vm0, %v4103_v4  ;;  %v4113_v16 = vld [vmem:[%s4595_s19 + $0x60] sm:$0xff]   ;;  %v4114_v17 = vld [vmem:[%s4595_s19 + $0x68] sm:$0xff]   ;;  %v4115_v18 = vld [vmem:[%s4595_s19 + $0x70] sm:$0xff]   ;;  %1218 = vmatpush1.bf16.msra.mxu0 %v4121_v22  ;;  %s4329_s12 = scalar_lea.vmem %s5217_s26, 2048 }
  0x5b   : > { %v4116_v19 = vld [vmem:[%s4595_s19 + $0x78] sm:$0xff]   ;;  %3981 = vmatpush3.bf16.msra.mxu1 %v4119_v20  ;;  %1219 = vmatprep.subr.bf16.mxu0 %v4126_v24  ;;  %v4658_v31 = vld [vmem:[#allocation2 + $0x40] ss:$8 sps:$4 sm:$0xff]   ;;  %v4667_v34 = vld [vmem:[#allocation2 + $0x64] ss:$8 sps:$4 sm:$0xff]   ;;  %s3582_s19 = sshll.u32 %s4492_s21, 11  ;;  %p4330_p12 = scmp.ne.s32.totalorder %s5217_s26, %s4329_s12 }
  0x5c   : > { %3982 = vmatprep.subr.bf16.mxu1 %v4120_v21  ;;  %v4661_v32 = vld [vmem:[#allocation2 + $0x54] ss:$8 sps:$4 sm:$0xff]   ;;  %v4664_v33 = vld [vmem:[#allocation2 + $0x50] ss:$8 sps:$4 sm:$0xff]   ;;  %v4670_v35 = vld [vmem:[#allocation2 + $0x60] ss:$8 sps:$4 sm:$0xff]   ;;  %s5215_s30 = scalar_lea.hbm %s5274_s11, %s3582_s19 }
  0x5d   : > { %v4677_v36 = vld [vmem:[%s5265_s2] ss:$0 sm:$0xff]  ;;  %p4331_p2 = pnand %p4330_p12, %p5297_p1  ;;  %s4408_s21 = smov [#allocation7]  }
  0x5e   : > { %1220 = vmatpush1.bf16.msra.mxu0 %v4124_v25  ;;  %s4333_s17 = sshll.u32 %s4408_s21, 4  ;;  %s4334_s17 = int_to_ptr.vmem [resolvable:$false] %s4333_s17 }
  0x5f   : > { %3983 = vmatpush3.bf16.msra.mxu1 %v4120_v21  ;;  %1221 = vmatprep.subr.bf16.mxu0 %v4129_v26  ;;  %p4332_p3 = pneg %p4331_p2  ;;  %s4335_s23 = scalar_lea.vmem %s4334_s17, 4096 }
  0x60   : > { %4016 = vmatprep.subr.bf16.mxu1 %v4123_v23  ;;  %p4336_p4 = scmp.lt.s32.totalorder %s5217_s26, %s4334_s17  ;;  %p4337_p7 = scmp.lt.s32.totalorder %s4335_s23, %s4329_s12 }
  0x61   : > { %3949 = vmatmul.mubr.msk.bf16.gmra.mrb[4].mxu0 %vm554_vm0, %v4104_v5 }
  0x62   : > { %3952 = vmatprep.mubr.msk.bf16.mxu0 %vm554_vm0, %v4105_v6  ;;  %1222 = vmatpush1.bf16.msra.mxu0 %v4647_v27  ;;  %p4338_p8 = por %p4337_p7, %p4336_p4 }
  0x63   : > { %1223 = vmatprep.subr.bf16.mxu0 %v4649_v28 }
  0x64   : > { %p4339_p11 = pnand %p4338_p8, %p4332_p3 }
  0x66   : > { %1224 = vmatpush1.bf16.msra.mxu0 %v4652_v29 }
  0x67   : > { %1225 = vmatprep.subr.bf16.mxu0 %v4655_v30 }
  0x69   : > { %3953 = vmatmul.mubr.msk.bf16.gmra.mrb[8].mxu0 %vm554_vm0, %v4106_v9 }
  0x6a   : > { %3956 = vmatprep.mubr.msk.bf16.mxu0 %vm554_vm0, %v4107_v10  ;;  %1226 = vmatpush1.bf16.msra.mxu0 %v4658_v31 }
  0x6b   : > { %1227 = vmatprep.subr.bf16.mxu0 %v4661_v32 }
  0x6e   : > { %1228 = vmatpush1.bf16.msra.mxu0 %v4664_v33 }
  0x6f   : > { %1229 = vmatprep.subr.bf16.mxu0 %v4667_v34 }
  0x71   : > { %3957 = vmatmul.mubr.msk.bf16.gmra.mrb[12].mxu0 %vm554_vm0, %v4108_v11 }
  0x72   : > { %3960 = vmatprep.mubr.msk.bf16.mxu0 %vm554_vm0, %v4109_v12  ;;  %1230 = vmatpush1.bf16.msra.mxu0 %v4670_v35 }
  0x79   : > { %3961 = vmatmul.mubr.msk.bf16.gmra.mrb[16].mxu0 %vm554_vm0, %v4110_v13 }
  0x7a   : > { %3964 = vmatprep.mubr.msk.bf16.mxu0 %vm554_vm0, %v4111_v14 }
  0x81   : > { %3965 = vmatmul.mubr.msk.bf16.gmra.mrb[20].mxu0 %vm554_vm0, %v4112_v15 }
  0x82   : > { %3968 = vmatprep.mubr.msk.bf16.mxu0 %vm554_vm0, %v4113_v16 }
  0x89   : > { %3969 = vmatmul.mubr.msk.bf16.gmra.mrb[24].mxu0 %vm554_vm0, %v4114_v17 }
  0x8a   : > { %3972 = vmatprep.mubr.msk.bf16.mxu0 %vm554_vm0, %v4115_v18 }
  0x91   : > { %3973 = vmatmul.mubr.msk.bf16.gmra.mrb[28].mxu0 %vm554_vm0, %v4116_v19 }
 0x12c   : > { %v3946_v37 = vpop.f32.mrb[0].mxu0 }
 0x12d   : > { %v646_v38 = vadd.f32 %v3946_v37, %v4677_v36  ;;  %v637_v39 = vpop.f32.mrb[1].mxu0 }
 0x12e   : > { %v638_v40 = vadd.f32 %v4677_v36, %v637_v39  ;;  %v3947_v41 = vpop.f32.mrb[2].mxu0 }
 0x12f   : > { %v649_v42 = vadd.f32 %v3947_v41, %v4677_v36  ;;  %v640_v43 = vpop.f32.mrb[3].mxu0  ;;  %v766_v45 = vmax.f32 %v646_v38, 0.0 }
 0x130   : > { %v641_v44 = vadd.f32 %v4677_v36, %v640_v43  ;;  %v764_v47 = vmax.f32 %v638_v40, 0.0 }
 0x131   : > { %v767_v46 = vmax.f32 %v649_v42, 0.0 }
 0x132   : > { %v765_v48 = vmax.f32 %v641_v44, 0.0 }
 0x133   : > { %v797_v49 = vpack.c.bf16 %v767_v46, %v766_v45 }
 0x134   : > { %v3950_v50 = vpop.f32.mrb[4].mxu0  ;;  %v796_v51 = vpack.c.bf16 %v765_v48, %v764_v47 }
 0x135   : > { %v662_v52 = vadd.f32 %v3950_v50, %v4677_v36  ;;  %v653_v53 = vpop.f32.mrb[5].mxu0 }
 0x136   : > { %v654_v54 = vadd.f32 %v4677_v36, %v653_v53  ;;  %3984 = vmatprep.mubr.msk.bf16.mxu1 %vm851_vm1, %v796_v51  ;;  %v3951_v55 = vpop.f32.mrb[6].mxu0 }
 0x137   : > { %v770_v56 = vmax.f32 %v662_v52, 0.0  ;;  %v665_v57 = vadd.f32 %v3951_v55, %v4677_v36  ;;  %3985 = vmatmul.mubr.msk.bf16.vlgmr.msra.gmra.mrb[0].mxu1 %vm851_vm1, %v797_v49  ;;  %v656_v58 = vpop.f32.mrb[7].mxu0 }
 0x138   : > { %v768_v59 = vmax.f32 %v654_v54, 0.0  ;;  %v657_v60 = vadd.f32 %v4677_v36, %v656_v58  ;;  %4024 = vmatpush1.bf16.msra.mxu1 %v4121_v22 }
 0x139   : > { %v771_v61 = vmax.f32 %v665_v57, 0.0  ;;  %4017 = vmatprep.subr.bf16.mxu1 %v4126_v24 }
 0x13a   : > { %v769_v62 = vmax.f32 %v657_v60, 0.0 }
 0x13b   : > { %v799_v63 = vpack.c.bf16 %v771_v61, %v770_v56 }
 0x13c   : > { %v798_v0 = vpack.c.bf16 %v769_v62, %v768_v59  ;;  %v3954_v1 = vpop.f32.mrb[8].mxu0  ;;  %4025 = vmatpush1.bf16.msra.mxu1 %v4124_v25 }
 0x13d   : > { %v678_v2 = vadd.f32 %v3954_v1, %v4677_v36  ;;  %v669_v3 = vpop.f32.mrb[9].mxu0  ;;  %4018 = vmatprep.subr.bf16.mxu1 %v4129_v26 }
 0x13e   : > { %3988 = vmatprep.mubr.msk.bf16.mxu1 %vm851_vm1, %v798_v0  ;;  %v670_v4 = vadd.f32 %v4677_v36, %v669_v3  ;;  %v3955_v5 = vpop.f32.mrb[10].mxu0 }
 0x13f   : > { %3989 = vmatmul.mubr.msk.bf16.gmra.mrb[4].mxu1 %vm851_vm1, %v799_v63  ;;  %v774_v6 = vmax.f32 %v678_v2, 0.0  ;;  %v681_v7 = vadd.f32 %v3955_v5, %v4677_v36  ;;  %v672_v8 = vpop.f32.mrb[11].mxu0 }
 0x140   : > { %v772_v9 = vmax.f32 %v670_v4, 0.0  ;;  %v673_v10 = vadd.f32 %v4677_v36, %v672_v8  ;;  %4026 = vmatpush1.bf16.msra.mxu1 %v4647_v27 }
 0x141   : > { %v775_v11 = vmax.f32 %v681_v7, 0.0  ;;  %4019 = vmatprep.subr.bf16.mxu1 %v4649_v28 }
 0x142   : > { %v773_v12 = vmax.f32 %v673_v10, 0.0 }
 0x143   : > { %v801_v13 = vpack.c.bf16 %v775_v11, %v774_v6 }
 0x144   : > { %v800_v14 = vpack.c.bf16 %v773_v12, %v772_v9  ;;  %v3958_v15 = vpop.f32.mrb[12].mxu0  ;;  %4027 = vmatpush1.bf16.msra.mxu1 %v4652_v29 }
 0x145   : > { %v694_v16 = vadd.f32 %v3958_v15, %v4677_v36  ;;  %v685_v17 = vpop.f32.mrb[13].mxu0  ;;  %4020 = vmatprep.subr.bf16.mxu1 %v4655_v30 }
 0x146   : > { %3992 = vmatprep.mubr.msk.bf16.mxu1 %vm851_vm1, %v800_v14  ;;  %v686_v18 = vadd.f32 %v4677_v36, %v685_v17  ;;  %v3959_v19 = vpop.f32.mrb[14].mxu0 }
 0x147   : > { %3993 = vmatmul.mubr.msk.bf16.gmra.mrb[8].mxu1 %vm851_vm1, %v801_v13  ;;  %v778_v20 = vmax.f32 %v694_v16, 0.0  ;;  %v697_v21 = vadd.f32 %v3959_v19, %v4677_v36  ;;  %v688_v22 = vpop.f32.mrb[15].mxu0 }
 0x148   : > { %v776_v23 = vmax.f32 %v686_v18, 0.0  ;;  %v689_v24 = vadd.f32 %v4677_v36, %v688_v22  ;;  %4028 = vmatpush1.bf16.msra.mxu1 %v4658_v31  ;;  %v4142_v22 = vld [vmem:[#allocation2 + $0x70] ss:$8 sps:$4 sm:$0xff]  }
 0x149   : > { %v779_v25 = vmax.f32 %v697_v21, 0.0  ;;  %4021 = vmatprep.subr.bf16.mxu1 %v4661_v32 }
 0x14a   : > { %v777_v26 = vmax.f32 %v689_v24, 0.0  ;;  %v4407_v24 = vmov 0  }
 0x14b   : > { %v803_v27 = vpack.c.bf16 %v779_v25, %v778_v20  ;;  %1249 = vmatprep.mubr.bf16.mxu0 %v4407_v24  ;;  %v4150_v25 = vld [vmem:[#allocation5 + $0xc] ss:$16 sps:$4 sm:$0xff]  }
 0x14c   : > { %v802_v28 = vpack.c.bf16 %v777_v26, %v776_v23  ;;  %v3962_v29 = vpop.f32.mrb[16].mxu0  ;;  %4029 = vmatpush1.bf16.msra.mxu1 %v4664_v33  ;;  %v4144_v23 = vld [vmem:[#allocation2 + $0x74] ss:$8 sps:$4 sm:$0xff]   ;;  %v4741_v26 = vld [vmem:[%s5267_s4] ss:$0 sm:$0xff] }
 0x14d   : > { %v710_v30 = vadd.f32 %v3962_v29, %v4677_v36  ;;  %v701_v37 = vpop.f32.mrb[17].mxu0  ;;  %4022 = vmatprep.subr.bf16.mxu1 %v4667_v34  ;;  %1231 = vmatprep.subr.bf16.mxu0 %v4144_v23 }
 0x14e   : > { %v702_v38 = vadd.f32 %v4677_v36, %v701_v37  ;;  %v3963_v39 = vpop.f32.mrb[18].mxu0  ;;  %3996 = vmatprep.mubr.msk.bf16.mxu1 %vm851_vm1, %v802_v28  ;;  %1232 = vmatpush1.bf16.msra.mxu0 %v4142_v22 }
 0x14f   : > { %v782_v31 = vmax.f32 %v710_v30, 0.0  ;;  %v713_v40 = vadd.f32 %v3963_v39, %v4677_v36  ;;  %v704_v32 = vpop.f32.mrb[19].mxu0  ;;  %3997 = vmatmul.mubr.msk.bf16.gmra.mrb[12].mxu1 %vm851_vm1, %v803_v27  ;;  %2105 = vmatprep.subr.bf16.mxu0 %v4150_v25 }
 0x150   : > { %v780_v41 = vmax.f32 %v702_v38, 0.0  ;;  %v705_v42 = vadd.f32 %v4677_v36, %v704_v32  ;;  %4030 = vmatpush1.bf16.msra.mxu1 %v4670_v35 }
 0x151   : > { %v783_v33 = vmax.f32 %v713_v40, 0.0  ;;  %4023 = vmatprep.subr.bf16.mxu1 %v4144_v23 }
 0x152   : > { %v781_v43 = vmax.f32 %v705_v42, 0.0 }
 0x153   : > { %v805_v44 = vpack.c.bf16 %v783_v33, %v782_v31 }
 0x154   : > { %v804_v34 = vpack.c.bf16 %v781_v43, %v780_v41  ;;  %v3966_v45 = vpop.f32.mrb[20].mxu0  ;;  %4031 = vmatpush1.bf16.msra.mxu1 %v4142_v22  ;;  %v4148_v43 = vld [vmem:[#allocation5 + $0x8] ss:$16 sps:$4 sm:$0xff]  }
 0x155   : > { %v726_v46 = vadd.f32 %v3966_v45, %v4677_v36  ;;  %v717_v47 = vpop.f32.mrb[21].mxu0  ;;  %v4156_v45 = vld [vmem:[#allocation5 + $0x2c] ss:$16 sps:$4 sm:$0xff]  }
 0x156   : > { %4000 = vmatprep.mubr.msk.bf16.mxu1 %vm851_vm1, %v804_v34  ;;  %v718_v48 = vadd.f32 %v4677_v36, %v717_v47  ;;  %v3967_v49 = vpop.f32.mrb[22].mxu0 }
 0x157   : > { %4001 = vmatmul.mubr.msk.bf16.gmra.mrb[16].mxu1 %vm851_vm1, %v805_v44  ;;  %v786_v50 = vmax.f32 %v726_v46, 0.0  ;;  %v729_v51 = vadd.f32 %v3967_v49, %v4677_v36  ;;  %v720_v52 = vpop.f32.mrb[23].mxu0 }
 0x158   : > { %v784_v35 = vmax.f32 %v718_v48, 0.0  ;;  %v721_v53 = vadd.f32 %v4677_v36, %v720_v52 }
 0x159   : > { %v787_v54 = vmax.f32 %v729_v51, 0.0 }
 0x15a   : > { %v785_v55 = vmax.f32 %v721_v53, 0.0 }
 0x15b   : > { %v807_v56 = vpack.c.bf16 %v787_v54, %v786_v50 }
 0x15c   : > { %v806_v57 = vpack.c.bf16 %v785_v55, %v784_v35  ;;  %v3970_v58 = vpop.f32.mrb[24].mxu0  ;;  %v4154_v35 = vld [vmem:[#allocation5 + $0x28] ss:$16 sps:$4 sm:$0xff]   ;;  %v4162_v55 = vld [vmem:[#allocation5 + $0x4c] ss:$16 sps:$4 sm:$0xff]  }
 0x15d   : > { %v742_v59 = vadd.f32 %v3970_v58, %v4677_v36  ;;  %v733_v60 = vpop.f32.mrb[25].mxu0 }
 0x15e   : > { %4004 = vmatprep.mubr.msk.bf16.mxu1 %vm851_vm1, %v806_v57  ;;  %v734_v61 = vadd.f32 %v4677_v36, %v733_v60  ;;  %v3971_v62 = vpop.f32.mrb[26].mxu0 }
 0x15f   : > { %4005 = vmatmul.mubr.msk.bf16.gmra.mrb[20].mxu1 %vm851_vm1, %v807_v56  ;;  %v790_v63 = vmax.f32 %v742_v59, 0.0  ;;  %v745_v0 = vadd.f32 %v3971_v62, %v4677_v36  ;;  %v736_v1 = vpop.f32.mrb[27].mxu0  ;;  %v4160_v59 = vld [vmem:[#allocation5 + $0x48] ss:$16 sps:$4 sm:$0xff]   ;;  %v4168_v62 = vld [vmem:[#allocation5 + $0x6c] ss:$16 sps:$4 sm:$0xff]  }
 0x160   : > { %v788_v2 = vmax.f32 %v734_v61, 0.0  ;;  %v737_v3 = vadd.f32 %v4677_v36, %v736_v1 }
 0x161   : > { %v791_v4 = vmax.f32 %v745_v0, 0.0 }
 0x162   : > { %v789_v5 = vmax.f32 %v737_v3, 0.0 }
 0x163   : > { %v809_v6 = vpack.c.bf16 %v791_v4, %v790_v63 }
 0x164   : > { %v808_v7 = vpack.c.bf16 %v789_v5, %v788_v2  ;;  %v3974_v8 = vpop.f32.mrb[28].mxu0 }
 0x165   : > { %v758_v9 = vadd.f32 %v3974_v8, %v4677_v36  ;;  %v749_v10 = vpop.f32.mrb[29].mxu0 }
 0x166   : > { %4008 = vmatprep.mubr.msk.bf16.mxu1 %vm851_vm1, %v808_v7  ;;  %v750_v11 = vadd.f32 %v4677_v36, %v749_v10  ;;  %v3975_v12 = vpop.f32.mrb[30].mxu0 }
 0x167   : > { %4009 = vmatmul.mubr.msk.bf16.gmra.mrb[24].mxu1 %vm851_vm1, %v809_v6  ;;  %v794_v13 = vmax.f32 %v758_v9, 0.0  ;;  %v761_v14 = vadd.f32 %v3975_v12, %v4677_v36  ;;  %v752_v15 = vpop.f32.mrb[31].mxu0  ;;  %v4166_v6 = vld [vmem:[#allocation5 + $0x68] ss:$16 sps:$4 sm:$0xff]   ;;  %v4174_v9 = vld [vmem:[#allocation5 + $0x8c] ss:$16 sps:$4 sm:$0xff]  }
 0x168   : > { %v792_v16 = vmax.f32 %v750_v11, 0.0  ;;  %v753_v17 = vadd.f32 %v4677_v36, %v752_v15  ;;  %v4147_v36 = vld [vmem:[#allocation5 + $0x4] ss:$16 sps:$4 sm:$0xff]  }
 0x169   : > { %v795_v18 = vmax.f32 %v761_v14, 0.0  ;;  %1912 = vmatprep.subr.bf16.mxu1 %v4147_v36  ;;  %v4178_v36 = vld [vmem:[#allocation5 + $0xa8] ss:$16 sps:$4 sm:$0xff]  }
 0x16a   : > { %v793_v19 = vmax.f32 %v753_v17, 0.0 }
 0x16b   : > { %v811_v20 = vpack.c.bf16 %v795_v18, %v794_v13  ;;  %v4172_v13 = vld [vmem:[#allocation5 + $0x88] ss:$16 sps:$4 sm:$0xff]  }
 0x16c   : > { %v810_v21 = vpack.c.bf16 %v793_v19, %v792_v16  ;;  %v4180_v16 = vld [vmem:[#allocation5 + $0xac] ss:$16 sps:$4 sm:$0xff]  }
 0x16e   : > { %4012 = vmatprep.mubr.msk.bf16.mxu1 %vm851_vm1, %v810_v21 }
 0x16f   : > { %4013 = vmatmul.mubr.msk.bf16.gmra.mrb[28].mxu1 %vm851_vm1, %v811_v20 }
 0x170   : > { %1329 = vmatprep.mubr.bf16.mxu1 %v4407_v24 }
 0x20a   : > { %v3986_v27 = vpop.f32.mrb[0].mxu1 }
 0x20b   : > { %v943_v28 = vadd.f32 %v3986_v27, %v4741_v26  ;;  %v934_v29 = vpop.f32.mrb[1].mxu1 }
 0x20c   : > { %v935_v30 = vadd.f32 %v4741_v26, %v934_v29  ;;  %v3987_v37 = vpop.f32.mrb[2].mxu1 }
 0x20d   : > { %v946_v38 = vadd.f32 %v3987_v37, %v4741_v26  ;;  %v937_v39 = vpop.f32.mrb[3].mxu1  ;;  %v1063_v40 = vmax.f32 %v943_v28, 0.0  ;;  %v4186_v28 = vld [vmem:[#allocation5 + $0xcc] ss:$16 sps:$4 sm:$0xff]  }
 0x20e   : > { %v938_v31 = vadd.f32 %v4741_v26, %v937_v39  ;;  %v1061_v41 = vmax.f32 %v935_v30, 0.0 }
 0x20f   : > { %v1064_v32 = vmax.f32 %v946_v38, 0.0  ;;  %v4184_v38 = vld [vmem:[#allocation5 + $0xc8] ss:$16 sps:$4 sm:$0xff]  }
 0x210   : > { %v1062_v42 = vmax.f32 %v938_v31, 0.0 }
 0x211   : > { %v1094_v33 = vpack.c.bf16 %v1064_v32, %v1063_v40  ;;  %v4192_v40 = vld [vmem:[#allocation5 + $0xec] ss:$16 sps:$4 sm:$0xff]  }
 0x212   : > { %v1093_v44 = vpack.c.bf16 %v1062_v42, %v1061_v41  ;;  %v3990_v34 = vpop.f32.mrb[4].mxu1 }
 0x213   : > { %v959_v46 = vadd.f32 %v3990_v34, %v4741_v26  ;;  %v950_v47 = vpop.f32.mrb[5].mxu1 }
 0x214   : > { %v951_v48 = vadd.f32 %v4741_v26, %v950_v47  ;;  %1250 = vmatmul.mubr.bf16.vlgmr.msra.gmra.mrb[32].mxu0 %v1093_v44  ;;  %v3991_v49 = vpop.f32.mrb[6].mxu1 }
 0x215   : > { %v1067_v50 = vmax.f32 %v959_v46, 0.0  ;;  %v962_v51 = vadd.f32 %v3991_v49, %v4741_v26  ;;  %v953_v52 = vpop.f32.mrb[7].mxu1  ;;  %1259 = vmatprep.mubr.bf16.mxu0 %v4407_v24  ;;  %2106 = vmatpush1.bf16.msra.mxu0 %v4148_v43 }
 0x216   : > { %v1065_v53 = vmax.f32 %v951_v48, 0.0  ;;  %v954_v54 = vadd.f32 %v4741_v26, %v953_v52  ;;  %2107 = vmatprep.subr.bf16.mxu0 %v4156_v45  ;;  %v4190_v45 = vld [vmem:[#allocation5 + $0xe8] ss:$16 sps:$4 sm:$0xff]   ;;  %v4198_v48 = vld [vmem:[#allocation5 + $0x10c] ss:$16 sps:$4 sm:$0xff]  }
 0x217   : > { %v1068_v56 = vmax.f32 %v962_v51, 0.0 }
 0x218   : > { %v1066_v57 = vmax.f32 %v954_v54, 0.0  ;;  %v4196_v54 = vld [vmem:[#allocation5 + $0x108] ss:$16 sps:$4 sm:$0xff]  }
 0x219   : > { %v1096_v58 = vpack.c.bf16 %v1068_v56, %v1067_v50  ;;  %2108 = vmatpush1.bf16.msra.mxu0 %v4154_v35 }
 0x21a   : > { %v1095_v60 = vpack.c.bf16 %v1066_v57, %v1065_v53  ;;  %v3994_v61 = vpop.f32.mrb[8].mxu1  ;;  %2109 = vmatprep.subr.bf16.mxu0 %v4162_v55  ;;  %v4145_v53 = vld [vmem:[#allocation5] ss:$16 sps:$4 sm:$0xff]   ;;  %v4153_v57 = vld [vmem:[#allocation5 + $0x24] ss:$16 sps:$4 sm:$0xff]  }
 0x21b   : > { %v975_v63 = vadd.f32 %v3994_v61, %v4741_v26  ;;  %v966_v0 = vpop.f32.mrb[9].mxu1 }
 0x21c   : > { %1260 = vmatmul.mubr.bf16.gmra.mrb[36].mxu0 %v1094_v33  ;;  %v967_v1 = vadd.f32 %v4741_v26, %v966_v0  ;;  %v3995_v2 = vpop.f32.mrb[10].mxu1 }
 0x21d   : > { %v1071_v3 = vmax.f32 %v975_v63, 0.0  ;;  %1269 = vmatprep.mubr.bf16.mxu0 %v4407_v24  ;;  %v978_v4 = vadd.f32 %v3995_v2, %v4741_v26  ;;  %v969_v5 = vpop.f32.mrb[11].mxu1  ;;  %2110 = vmatpush1.bf16.msra.mxu0 %v4160_v59  ;;  %v4151_v2 = vld [vmem:[#allocation5 + $0x20] ss:$16 sps:$4 sm:$0xff]  }
 0x21e   : > { %v1069_v7 = vmax.f32 %v967_v1, 0.0  ;;  %v970_v8 = vadd.f32 %v4741_v26, %v969_v5  ;;  %2111 = vmatprep.subr.bf16.mxu0 %v4168_v62  ;;  %v4159_v5 = vld [vmem:[#allocation5 + $0x44] ss:$16 sps:$4 sm:$0xff]  }
 0x21f   : > { %v1072_v10 = vmax.f32 %v978_v4, 0.0 }
 0x220   : > { %v1070_v11 = vmax.f32 %v970_v8, 0.0 }
 0x221   : > { %v4757_v12 = vpack.c.bf16 %v1072_v10, %v1071_v3  ;;  %2112 = vmatpush1.bf16.msra.mxu0 %v4166_v6  ;;  %v4202_v3 = vld [vmem:[#allocation5 + $0x128] ss:$16 sps:$4 sm:$0xff]   ;;  %v4210_v6 = vld [vmem:[#allocation5 + $0x14c] ss:$16 sps:$4 sm:$0xff]  }
 0x222   : > { %v1097_v14 = vpack.c.bf16 %v1070_v11, %v1069_v7  ;;  %v3998_v15 = vpop.f32.mrb[12].mxu1  ;;  %2113 = vmatprep.subr.bf16.mxu0 %v4174_v9  ;;  %v4157_v11 = vld [vmem:[#allocation5 + $0x40] ss:$16 sps:$4 sm:$0xff]  }
 0x223   : > { %v991_v17 = vadd.f32 %v3998_v15, %v4741_v26  ;;  %v982_v18 = vpop.f32.mrb[13].mxu1 }
 0x224   : > { %1270 = vmatmul.mubr.bf16.gmra.mrb[40].mxu0 %v1095_v60  ;;  %v983_v19 = vadd.f32 %v4741_v26, %v982_v18  ;;  %v3999_v20 = vpop.f32.mrb[14].mxu1 }
 0x225   : > { %1279 = vmatprep.mubr.bf16.mxu0 %v4407_v24  ;;  %v1075_v21 = vmax.f32 %v991_v17, 0.0  ;;  %v994_v22 = vadd.f32 %v3999_v20, %v4741_v26  ;;  %v985_v23 = vpop.f32.mrb[15].mxu1  ;;  %2114 = vmatpush1.bf16.msra.mxu0 %v4172_v13  ;;  %v4208_v13 = vld [vmem:[#allocation5 + $0x148] ss:$16 sps:$4 sm:$0xff]   ;;  %v4216_v17 = vld [vmem:[#allocation5 + $0x16c] ss:$16 sps:$4 sm:$0xff]  }
 0x226   : > { %v1073_v25 = vmax.f32 %v983_v19, 0.0  ;;  %v986_v27 = vadd.f32 %v4741_v26, %v985_v23  ;;  %2115 = vmatprep.subr.bf16.mxu0 %v4180_v16  ;;  %v4165_v16 = vld [vmem:[#allocation5 + $0x64] ss:$16 sps:$4 sm:$0xff]  }
 0x227   : > { %v1076_v29 = vmax.f32 %v994_v22, 0.0 }
 0x228   : > { %v1074_v30 = vmax.f32 %v986_v27, 0.0  ;;  %v4214_v27 = vld [vmem:[#allocation5 + $0x168] ss:$16 sps:$4 sm:$0xff]  }
 0x229   : > { %v4764_v37 = vpack.c.bf16 %v1076_v29, %v1075_v21  ;;  %2116 = vmatpush1.bf16.msra.mxu0 %v4178_v36  ;;  %v4222_v29 = vld [vmem:[#allocation5 + $0x18c] ss:$16 sps:$4 sm:$0xff]  }
 0x22a   : > { %v4766_v39 = vpack.c.bf16 %v1074_v30, %v1073_v25  ;;  %v4002_v31 = vpop.f32.mrb[16].mxu1  ;;  %2117 = vmatprep.subr.bf16.mxu0 %v4186_v28  ;;  %v4163_v25 = vld [vmem:[#allocation5 + $0x60] ss:$16 sps:$4 sm:$0xff]   ;;  %v4171_v28 = vld [vmem:[#allocation5 + $0x84] ss:$16 sps:$4 sm:$0xff]  }
 0x22b   : > { %v1007_v32 = vadd.f32 %v4002_v31, %v4741_v26  ;;  %v998_v41 = vpop.f32.mrb[17].mxu1 }
 0x22c   : > { %1280 = vmatmul.mubr.bf16.gmra.mrb[44].mxu0 %v1096_v58  ;;  %v999_v42 = vadd.f32 %v4741_v26, %v998_v41  ;;  %v4003_v33 = vpop.f32.mrb[18].mxu1  ;;  %v4204_v58 = vld [vmem:[#allocation5 + $0x12c] ss:$16 sps:$4 sm:$0xff]   ;;  %v4220_v41 = vld [vmem:[#allocation5 + $0x188] ss:$16 sps:$4 sm:$0xff]  }
 0x22d   : > { %1289 = vmatprep.mubr.bf16.mxu0 %v4407_v24  ;;  %v1079_v43 = vmax.f32 %v1007_v32, 0.0  ;;  %v1010_v44 = vadd.f32 %v4003_v33, %v4741_v26  ;;  %v1001_v34 = vpop.f32.mrb[19].mxu1  ;;  %2118 = vmatpush1.bf16.msra.mxu0 %v4184_v38  ;;  %v4169_v32 = vld [vmem:[#allocation5 + $0x80] ss:$16 sps:$4 sm:$0xff]  }
 0x22e   : > { %v1077_v46 = vmax.f32 %v999_v42, 0.0  ;;  %v1002_v47 = vadd.f32 %v4741_v26, %v1001_v34  ;;  %2119 = vmatprep.subr.bf16.mxu0 %v4192_v40 }
 0x22f   : > { %v1080_v49 = vmax.f32 %v1010_v44, 0.0  ;;  %v4228_v44 = vld [vmem:[#allocation5 + $0x1ac] ss:$16 sps:$4 sm:$0xff]  }
 0x230   : > { %v1078_v50 = vmax.f32 %v1002_v47, 0.0 }
 0x231   : > { %v1102_v51 = vpack.c.bf16 %v1080_v49, %v1079_v43  ;;  %2120 = vmatpush1.bf16.msra.mxu0 %v4190_v45  ;;  %v4177_v43 = vld [vmem:[#allocation5 + $0xa4] ss:$16 sps:$4 sm:$0xff]  }
 0x232   : > { %v1101_v52 = vpack.c.bf16 %v1078_v50, %v1077_v46  ;;  %v4006_v35 = vpop.f32.mrb[20].mxu1  ;;  %2121 = vmatprep.subr.bf16.mxu0 %v4198_v48 }
 0x233   : > { %v1023_v55 = vadd.f32 %v4006_v35, %v4741_v26  ;;  %v1014_v56 = vpop.f32.mrb[21].mxu1  ;;  %v4183_v35 = vld [vmem:[#allocation5 + $0xc4] ss:$16 sps:$4 sm:$0xff]  }
 0x234   : > { %1290 = vmatmul.mubr.bf16.gmra.mrb[48].mxu0 %v1097_v14  ;;  %1330 = vmatmul.mubr.bf16.vlgmr.msra.gmra.mrb[32].mxu1 %v1101_v52  ;;  %v1015_v59 = vadd.f32 %v4741_v26, %v1014_v56  ;;  %v4007_v60 = vpop.f32.mrb[22].mxu1  ;;  %v4226_v52 = vld [vmem:[#allocation5 + $0x1a8] ss:$16 sps:$4 sm:$0xff]   ;;  %v4181_v56 = vld [vmem:[#allocation5 + $0xc0] ss:$16 sps:$4 sm:$0xff]  }
 0x235   : > { %1299 = vmatprep.mubr.bf16.mxu0 %v4407_v24  ;;  %v1083_v61 = vmax.f32 %v1023_v55, 0.0  ;;  %1339 = vmatprep.mubr.bf16.mxu1 %v4407_v24  ;;  %v1026_v62 = vadd.f32 %v4007_v60, %v4741_v26  ;;  %v1017_v63 = vpop.f32.mrb[23].mxu1  ;;  %v4201_v60 = vld [vmem:[#allocation5 + $0x124] ss:$16 sps:$4 sm:$0xff]  }
 0x236   : > { %v1081_v0 = vmax.f32 %v1015_v59, 0.0  ;;  %v1018_v1 = vadd.f32 %v4741_v26, %v1017_v63  ;;  %1913 = vmatpush1.bf16.msra.mxu1 %v4145_v53  ;;  %2122 = vmatpush1.bf16.msra.mxu0 %v4196_v54  ;;  %v4193_v59 = vld [vmem:[#allocation5 + $0x100] ss:$16 sps:$4 sm:$0xff]   ;;  %v4213_v63 = vld [vmem:[#allocation5 + $0x164] ss:$16 sps:$4 sm:$0xff]  }
 0x237   : > { %v1084_v4 = vmax.f32 %v1026_v62, 0.0  ;;  %1914 = vmatprep.subr.bf16.mxu1 %v4153_v57  ;;  %2123 = vmatprep.subr.bf16.mxu0 %v4204_v58  ;;  %v4189_v57 = vld [vmem:[#allocation5 + $0xe4] ss:$16 sps:$4 sm:$0xff]  }
 0x238   : > { %v1082_v7 = vmax.f32 %v1018_v1, 0.0  ;;  %v4195_v58 = vld [vmem:[#allocation5 + $0x104] ss:$16 sps:$4 sm:$0xff]  }
 0x239   : > { %v4779_v8 = vpack.c.bf16 %v1084_v4, %v1083_v61  ;;  %v4199_v61 = vld [vmem:[#allocation5 + $0x120] ss:$16 sps:$4 sm:$0xff]   ;;  %v4207_v62 = vld [vmem:[#allocation5 + $0x144] ss:$16 sps:$4 sm:$0xff]  }
 0x23a   : > { %v1103_v9 = vpack.c.bf16 %v1082_v7, %v1081_v0  ;;  %v4010_v10 = vpop.f32.mrb[24].mxu1  ;;  %1915 = vmatpush1.bf16.msra.mxu1 %v4151_v2  ;;  %2124 = vmatpush1.bf16.msra.mxu0 %v4202_v3  ;;  %v4211_v0 = vld [vmem:[#allocation5 + $0x160] ss:$16 sps:$4 sm:$0xff]   ;;  %v4219_v1 = vld [vmem:[#allocation5 + $0x184] ss:$16 sps:$4 sm:$0xff]  }
 0x23b   : > { %v1039_v14 = vadd.f32 %v4010_v10, %v4741_v26  ;;  %v1030_v15 = vpop.f32.mrb[25].mxu1  ;;  %1916 = vmatprep.subr.bf16.mxu1 %v4159_v5  ;;  %2125 = vmatprep.subr.bf16.mxu0 %v4210_v6  ;;  %v4217_v2 = vld [vmem:[#allocation5 + $0x180] ss:$16 sps:$4 sm:$0xff]   ;;  %v4225_v3 = vld [vmem:[#allocation5 + $0x1a4] ss:$16 sps:$4 sm:$0xff]  }
 0x23c   : > { %1300 = vmatmul.mubr.bf16.gmra.mrb[52].mxu0 %v4757_v12  ;;  %1340 = vmatmul.mubr.bf16.gmra.mrb[36].mxu1 %v1102_v51  ;;  %v1031_v18 = vadd.f32 %v4741_v26, %v1030_v15  ;;  %v4011_v19 = vpop.f32.mrb[26].mxu1  ;;  %v4175_v51 = vld [vmem:[#allocation5 + $0xa0] ss:$16 sps:$4 sm:$0xff]   ;;  %v4231_v5 = vld [vmem:[#allocation5 + $0x1c4] ss:$16 sps:$4 sm:$0xff]   ;;  %v1127_v15 = vlaneseq }
 0x23d   : > { %1309 = vmatprep.mubr.bf16.mxu0 %v4407_v24  ;;  %1349 = vmatprep.mubr.bf16.mxu1 %v4407_v24  ;;  %v1087_v20 = vmax.f32 %v1039_v14, 0.0  ;;  %v1042_v21 = vadd.f32 %v4011_v19, %v4741_v26  ;;  %v1033_v22 = vpop.f32.mrb[27].mxu1  ;;  %v4223_v4 = vld [vmem:[#allocation5 + $0x1a0] ss:$16 sps:$4 sm:$0xff]   ;;  %v4234_v6 = vld [vmem:[#allocation5 + $0x1cc] ss:$16 sps:$4 sm:$0xff]  }
 0x23e   : > { %v1085_v23 = vmax.f32 %v1031_v18, 0.0  ;;  %v1034_v36 = vadd.f32 %v4741_v26, %v1033_v22  ;;  %1917 = vmatpush1.bf16.msra.mxu1 %v4157_v11  ;;  %2126 = vmatpush1.bf16.msra.mxu0 %v4208_v13  ;;  %v4232_v7 = vld [vmem:[#allocation5 + $0x1c8] ss:$16 sps:$4 sm:$0xff]   ;;  %v4240_v10 = vld [vmem:[#allocation5 + $0x1ec] ss:$16 sps:$4 sm:$0xff]   ;;  %v4243_v14 = vld [vmem:[%s5272_s9 + $0xc0] sm:$0xff]  }
 0x23f   : > { %v1088_v12 = vmax.f32 %v1042_v21, 0.0  ;;  %1918 = vmatprep.subr.bf16.mxu1 %v4165_v16  ;;  %2127 = vmatprep.subr.bf16.mxu0 %v4216_v17  ;;  %v4238_v11 = vld [vmem:[#allocation5 + $0x1e8] ss:$16 sps:$4 sm:$0xff]   ;;  %v4235_v13 = vld [vmem:[#allocation5 + $0x1e0] ss:$16 sps:$4 sm:$0xff]   ;;  %v4807_v16 = vshrl.u32 %v1127_v15, 7 }
 0x240   : > { %v1086_v30 = vmax.f32 %v1034_v36, 0.0  ;;  %v1125_v18 = vld [vmem:[%s5269_s6] sm:$0x3] }
 0x241   : > { %v1106_v38 = vpack.c.bf16 %v1088_v12, %v1087_v20  ;;  %v1129_v17 = vsub.s32 0, %v4807_v16  ;;  %v1133_v19 = vsub.s32 1, %v4807_v16 }
 0x242   : > { %v1105_v31 = vpack.c.bf16 %v1086_v30, %v1085_v23  ;;  %v4014_v40 = vpop.f32.mrb[28].mxu1  ;;  %1919 = vmatpush1.bf16.msra.mxu1 %v4163_v25  ;;  %2128 = vmatpush1.bf16.msra.mxu0 %v4214_v27 }
 0x243   : > { %v1055_v42 = vadd.f32 %v4014_v40, %v4741_v26  ;;  %v1046_v33 = vpop.f32.mrb[29].mxu1  ;;  %1920 = vmatprep.subr.bf16.mxu1 %v4171_v28  ;;  %2129 = vmatprep.subr.bf16.mxu0 %v4222_v29  ;;  %v4816_v20 = vrot.slane %v1125_v18, %v1129_v17  ;;  %v4820_v21 = vrot.slane %v1125_v18, %v1133_v19 }
 0x244   : > { %1310 = vmatmul.mubr.bf16.gmra.mrb[56].mxu0 %v4766_v39  ;;  %1350 = vmatmul.mubr.bf16.gmra.mrb[40].mxu1 %v1103_v9  ;;  %v1047_v34 = vadd.f32 %v4741_v26, %v1046_v33  ;;  %v4015_v45 = vpop.f32.mrb[30].mxu1  ;;  %v4237_v9 = vld [vmem:[#allocation5 + $0x1e4] ss:$16 sps:$4 sm:$0xff]  }
 0x245   : > { %1319 = vmatprep.mubr.bf16.mxu0 %v4407_v24  ;;  %1359 = vmatprep.mubr.bf16.mxu1 %v4407_v24  ;;  %v1091_v46 = vmax.f32 %v1055_v42, 0.0  ;;  %v1058_v47 = vadd.f32 %v4015_v45, %v4741_v26  ;;  %v1049_v48 = vpop.f32.mrb[31].mxu1  ;;  %v4242_v33 = vld [vmem:[%s5272_s9] sm:$0xff]   ;;  %v4245_v45 = vld [vmem:[%s5272_s9 + $0x48] sm:$0xff]  }
 0x246   : > { %v1089_v49 = vmax.f32 %v1047_v34, 0.0  ;;  %v1050_v50 = vadd.f32 %v4741_v26, %v1049_v48  ;;  %1921 = vmatpush1.bf16.msra.mxu1 %v4169_v32  ;;  %2130 = vmatpush1.bf16.msra.mxu0 %v4220_v41  ;;  %v4187_v26 = vld [vmem:[#allocation5 + $0xe0] ss:$16 sps:$4 sm:$0xff]  }
 0x247   : > { %v1092_v39 = vmax.f32 %v1058_v47, 0.0  ;;  %1922 = vmatprep.subr.bf16.mxu1 %v4177_v43  ;;  %2131 = vmatprep.subr.bf16.mxu0 %v4228_v44  ;;  %v4244_v43 = vld [vmem:[%s5272_s9 + $0x80] sm:$0xff]  }
 0x248   : > { %v1090_v53 = vmax.f32 %v1050_v50, 0.0 }
 0x249   : > { %v1108_v54 = vpack.c.bf16 %v1092_v39, %v1091_v46  ;;  %v4247_v46 = vld [vmem:[%s5272_s9 + $0xc8] sm:$0xff]  }
 0x24a   : > { %v1107_v55 = vpack.c.bf16 %v1090_v53, %v1089_v49  ;;  %1923 = vmatpush1.bf16.msra.mxu1 %v4175_v51  ;;  %2132 = vmatpush1.bf16.msra.mxu0 %v4226_v52  ;;  %v4246_v52 = vld [vmem:[%s5272_s9 + $0x8] sm:$0xff]  }
 0x24b   : > { %1924 = vmatprep.subr.bf16.mxu1 %v4183_v35  ;;  %2133 = vmatprep.subr.bf16.mxu0 %v4234_v6  ;;  %v4248_v39 = vld [vmem:[%s5272_s9 + $0x88] sm:$0xff]   ;;  %v4254_v6 = vld [vmem:[%s5272_s9 + $0x18] sm:$0xff]  }
 0x24c   : > { %1320 = vmatmul.mubr.bf16.gmra.mrb[60].mxu0 %v4764_v37  ;;  %1360 = vmatmul.mubr.bf16.gmra.mrb[44].mxu1 %v4779_v8  ;;  %v4205_v37 = vld [vmem:[#allocation5 + $0x140] ss:$16 sps:$4 sm:$0xff]  }
 0x24d   : > { %1369 = vmatprep.mubr.bf16.mxu1 %v4407_v24  ;;  %v4229_v8 = vld [vmem:[#allocation5 + $0x1c0] ss:$16 sps:$4 sm:$0xff]  }
 0x24e   : > { %1925 = vmatpush1.bf16.msra.mxu1 %v4181_v56  ;;  %2134 = vmatpush1.bf16.msra.mxu0 %v4232_v7  ;;  %v4256_v7 = vld [vmem:[%s5272_s9 + $0x98] sm:$0xff]  }
 0x24f   : > { %1926 = vmatprep.subr.bf16.mxu1 %v4189_v57  ;;  %2135 = vmatprep.subr.bf16.mxu0 %v4240_v10  ;;  %v4257_v10 = vld [vmem:[%s5272_s9 + $0x60] sm:$0xff]  }
 0x252   : > { %1927 = vmatpush1.bf16.msra.mxu1 %v4187_v26  ;;  %2136 = vmatpush1.bf16.msra.mxu0 %v4238_v11  ;;  %v4259_v11 = vld [vmem:[%s5272_s9 + $0xe0] sm:$0xff]  }
 0x253   : > { %1928 = vmatprep.subr.bf16.mxu1 %v4195_v58  ;;  %3828 = vmatprep.subr.bf16.mxu0 %v4243_v14 }
 0x254   : > { %1370 = vmatmul.mubr.bf16.gmra.mrb[48].mxu1 %v1105_v31 }
 0x255   : > { %1379 = vmatprep.mubr.bf16.mxu1 %v4407_v24 }
 0x256   : > { %1929 = vmatpush1.bf16.msra.mxu1 %v4193_v59 }
 0x257   : > { %1930 = vmatprep.subr.bf16.mxu1 %v4201_v60  ;;  %v4250_v60 = vld [vmem:[%s5272_s9 + $0x10] sm:$0xff]  }
 0x25a   : > { %1931 = vmatpush1.bf16.msra.mxu1 %v4199_v61  ;;  %v4252_v61 = vld [vmem:[%s5272_s9 + $0x90] sm:$0xff]  }
 0x25b   : > { %1932 = vmatprep.subr.bf16.mxu1 %v4207_v62 }
 0x25c   : > { %1380 = vmatmul.mubr.bf16.gmra.mrb[52].mxu1 %v1106_v38 }
 0x25d   : > { %1389 = vmatprep.mubr.bf16.mxu1 %v4407_v24 }
 0x25e   : > { %1933 = vmatpush1.bf16.msra.mxu1 %v4205_v37 }
 0x25f   : > { %1934 = vmatprep.subr.bf16.mxu1 %v4213_v63  ;;  %v4253_v63 = vld [vmem:[%s5272_s9 + $0x58] sm:$0xff]  }
 0x262   : > { %1935 = vmatpush1.bf16.msra.mxu1 %v4211_v0  ;;  %v4255_v0 = vld [vmem:[%s5272_s9 + $0xd8] sm:$0xff]  }
 0x263   : > { %1936 = vmatprep.subr.bf16.mxu1 %v4219_v1 }
 0x264   : > { %1390 = vmatmul.mubr.bf16.gmra.mrb[56].mxu1 %v1107_v55  ;;  %v4251_v55 = vld [vmem:[%s5272_s9 + $0xd0] sm:$0xff]  }
 0x265   : > { %1399 = vmatprep.mubr.bf16.mxu1 %v4407_v24  ;;  %v4241_v24 = vld [vmem:[%s5272_s9 + $0x40] sm:$0xff]  }
 0x266   : > { %1937 = vmatpush1.bf16.msra.mxu1 %v4217_v2 }
 0x267   : > { %1938 = vmatprep.subr.bf16.mxu1 %v4225_v3 }
 0x26a   : > { %1939 = vmatpush1.bf16.msra.mxu1 %v4223_v4 }
 0x26b   : > { %1940 = vmatprep.subr.bf16.mxu1 %v4231_v5 }
 0x26c   : > { %1400 = vmatmul.mubr.bf16.gmra.mrb[60].mxu1 %v1108_v54  ;;  %v4249_v54 = vld [vmem:[%s5272_s9 + $0x50] sm:$0xff]  }
 0x26e   : > { %1941 = vmatpush1.bf16.msra.mxu1 %v4229_v8 }
 0x26f   : > { %1942 = vmatprep.subr.bf16.mxu1 %v4237_v9 }
 0x272   : > { %1943 = vmatpush1.bf16.msra.mxu1 %v4235_v13 }
 0x273   : > { %3716 = vmatprep.subr.bf16.mxu1 %v4241_v24 }
 0x2e7   : > { %v1251_v22 = vpop.f32.mrb[32].mxu0 }
 0x2e8   : > { %v1252_v23 = vadd.f32 %v1251_v22, %v4816_v20  ;;  %v1253_v36 = vpop.f32.mrb[33].mxu0  ;;  %v4258_v22 = vld [vmem:[%s5272_s9 + $0x20] sm:$0xff]  }
 0x2e9   : > { %v1254_v25 = vadd.f32 %v1253_v36, %v4820_v21  ;;  %v1255_v27 = vpop.f32.mrb[34].mxu0 }
 0x2ea   : > { %v1256_v12 = vadd.f32 %v1255_v27, %v4816_v20  ;;  %v1257_v28 = vpop.f32.mrb[35].mxu0  ;;  %v1410_v30 = vmax.f32 %v1252_v23, 0.0  ;;  %v4260_v23 = vld [vmem:[%s5272_s9 + $0xa0] sm:$0xff]   ;;  %v4261_v27 = vld [vmem:[%s5272_s9 + $0x68] sm:$0xff]  }
 0x2eb   : > { %v1258_v29 = vadd.f32 %v1257_v28, %v4820_v21  ;;  %v1411_v31 = vmax.f32 %v1254_v25, 0.0 }
 0x2ec   : > { %v1412_v38 = vmax.f32 %v1256_v12, 0.0  ;;  %v4263_v12 = vld [vmem:[%s5272_s9 + $0xe8] sm:$0xff]  }
 0x2ed   : > { %v1413_v40 = vmax.f32 %v1258_v29, 0.0 }
 0x2ee   : > { %v1474_v32 = vpack.c.bf16 %v1412_v38, %v1410_v30 }
 0x2ef   : > { %v1475_v41 = vpack.c.bf16 %v1413_v40, %v1411_v31  ;;  %v1261_v42 = vpop.f32.mrb[36].mxu0  ;;  %v4262_v40 = vld [vmem:[%s5272_s9 + $0x28] sm:$0xff]  }
 0x2f0   : > { %v1262_v44 = vadd.f32 %v1261_v42, %v4816_v20  ;;  %v1263_v34 = vpop.f32.mrb[37].mxu0 }
 0x2f1   : > { %v1264_v47 = vadd.f32 %v1263_v34, %v4820_v21  ;;  %v1265_v48 = vpop.f32.mrb[38].mxu0  ;;  %1944 = vmatprep.mubr.bf16.mxu1 %v1475_v41  ;;  %2137 = vmatprep.mubr.bf16.mxu0 %v1475_v41 }
 0x2f2   : > { %v1266_v49 = vadd.f32 %v1265_v48, %v4816_v20  ;;  %v1267_v50 = vpop.f32.mrb[39].mxu0  ;;  %1945 = vmatmul.mubr.bf16.vlgmr.msra.gmra.mrb[64].mxu1 %v1474_v32  ;;  %2138 = vmatmul.mubr.bf16.vlgmr.msra.gmra.mrb[64].mxu0 %v1474_v32  ;;  %v1414_v35 = vmax.f32 %v1262_v44, 0.0  ;;  %v4264_v32 = vld [vmem:[%s5272_s9 + $0xa8] sm:$0xff]  }
 0x2f3   : > { %v1268_v51 = vadd.f32 %v1267_v50, %v4820_v21  ;;  %3717 = vmatpush3.bf16.msra.mxu1 %v4242_v33  ;;  %3829 = vmatpush3.bf16.msra.mxu0 %v4244_v43  ;;  %v1415_v56 = vmax.f32 %v1264_v47, 0.0  ;;  %v4265_v33 = vld [vmem:[%s5272_s9 + $0x70] sm:$0xff]  }
 0x2f4   : > { %v1416_v53 = vmax.f32 %v1266_v49, 0.0  ;;  %3718 = vmatprep.subr.bf16.mxu1 %v4245_v45  ;;  %3830 = vmatprep.subr.bf16.mxu0 %v4247_v46  ;;  %v4267_v43 = vld [vmem:[%s5272_s9 + $0xf0] sm:$0xff]  }
 0x2f5   : > { %v1417_v57 = vmax.f32 %v1268_v51, 0.0  ;;  %v4266_v49 = vld [vmem:[%s5272_s9 + $0x30] sm:$0xff]  }
 0x2f6   : > { %v1476_v26 = vpack.c.bf16 %v1416_v53, %v1414_v35  ;;  %v4268_v50 = vld [vmem:[%s5272_s9 + $0xb0] sm:$0xff]   ;;  %v4269_v53 = vld [vmem:[%s5272_s9 + $0x78] sm:$0xff]  }
 0x2f7   : > { %v1477_v58 = vpack.c.bf16 %v1417_v57, %v1415_v56  ;;  %v1271_v59 = vpop.f32.mrb[40].mxu0  ;;  %3719 = vmatpush3.bf16.msra.mxu1 %v4246_v52  ;;  %3831 = vmatpush3.bf16.msra.mxu0 %v4248_v39 }
 0x2f8   : > { %v1272_v62 = vadd.f32 %v1271_v59, %v4816_v20  ;;  %v1273_v37 = vpop.f32.mrb[41].mxu0  ;;  %3720 = vmatprep.subr.bf16.mxu1 %v4249_v54  ;;  %3832 = vmatprep.subr.bf16.mxu0 %v4251_v55  ;;  %v4271_v54 = vld [vmem:[%s5272_s9 + $0xf8] sm:$0xff]  }
 0x2f9   : > { %v1274_v1 = vadd.f32 %v1273_v37, %v4820_v21  ;;  %v1275_v2 = vpop.f32.mrb[42].mxu0  ;;  %1954 = vmatprep.mubr.bf16.mxu1 %v1477_v58  ;;  %2147 = vmatprep.mubr.bf16.mxu0 %v1477_v58 }
 0x2fa   : > { %v1276_v3 = vadd.f32 %v1275_v2, %v4816_v20  ;;  %v1277_v4 = vpop.f32.mrb[43].mxu0  ;;  %1955 = vmatmul.mubr.bf16.gmra.mrb[68].mxu1 %v1476_v26  ;;  %2148 = vmatmul.mubr.bf16.gmra.mrb[68].mxu0 %v1476_v26  ;;  %v1418_v8 = vmax.f32 %v1272_v62, 0.0  ;;  %v4272_v2 = vld [vmem:[%s5272_s9 + $0xb8] sm:$0xff]  }
 0x2fb   : > { %v1278_v5 = vadd.f32 %v1277_v4, %v4820_v21  ;;  %3721 = vmatpush3.bf16.msra.mxu1 %v4250_v60  ;;  %3833 = vmatpush3.bf16.msra.mxu0 %v4252_v61  ;;  %v1419_v13 = vmax.f32 %v1274_v1, 0.0  ;;  %v4270_v1 = vld [vmem:[%s5272_s9 + $0x38] sm:$0xff]  }
 0x2fc   : > { %v1420_v9 = vmax.f32 %v1276_v3, 0.0  ;;  %3722 = vmatprep.subr.bf16.mxu1 %v4253_v63  ;;  %3834 = vmatprep.subr.bf16.mxu0 %v4255_v0 }
 0x2fd   : > { %v1421_v24 = vmax.f32 %v1278_v5, 0.0 }
 0x2fe   : > { %v1478_v14 = vpack.c.bf16 %v1420_v9, %v1418_v8 }
 0x2ff   : > { %v1479_v15 = vpack.c.bf16 %v1421_v24, %v1419_v13  ;;  %v1281_v18 = vpop.f32.mrb[44].mxu0  ;;  %3723 = vmatpush3.bf16.msra.mxu1 %v4254_v6  ;;  %3835 = vmatpush3.bf16.msra.mxu0 %v4256_v7 }
 0x300   : > { %v1282_v36 = vadd.f32 %v1281_v18, %v4816_v20  ;;  %v1283_v25 = vpop.f32.mrb[45].mxu0  ;;  %3724 = vmatprep.subr.bf16.mxu1 %v4257_v10  ;;  %3836 = vmatprep.subr.bf16.mxu0 %v4259_v11 }
 0x301   : > { %v1284_v28 = vadd.f32 %v1283_v25, %v4820_v21  ;;  %v1285_v29 = vpop.f32.mrb[46].mxu0  ;;  %1964 = vmatprep.mubr.bf16.mxu1 %v1479_v15  ;;  %2157 = vmatprep.mubr.bf16.mxu0 %v1479_v15 }
 0x302   : > { %v1286_v30 = vadd.f32 %v1285_v29, %v4816_v20  ;;  %v1287_v38 = vpop.f32.mrb[47].mxu0  ;;  %1965 = vmatmul.mubr.bf16.gmra.mrb[72].mxu1 %v1478_v14  ;;  %2158 = vmatmul.mubr.bf16.gmra.mrb[72].mxu0 %v1478_v14  ;;  %v1422_v41 = vmax.f32 %v1282_v36, 0.0 }
 0x303   : > { %v1288_v31 = vadd.f32 %v1287_v38, %v4820_v21  ;;  %3725 = vmatpush3.bf16.msra.mxu1 %v4258_v22  ;;  %3837 = vmatpush3.bf16.msra.mxu0 %v4260_v23  ;;  %v1423_v44 = vmax.f32 %v1284_v28, 0.0 }
 0x304   : > { %v1424_v42 = vmax.f32 %v1286_v30, 0.0  ;;  %3726 = vmatprep.subr.bf16.mxu1 %v4261_v27  ;;  %3838 = vmatprep.subr.bf16.mxu0 %v4263_v12 }
 0x305   : > { %v1425_v34 = vmax.f32 %v1288_v31, 0.0 }
 0x306   : > { %v1480_v45 = vpack.c.bf16 %v1424_v42, %v1422_v41 }
 0x307   : > { %v1481_v46 = vpack.c.bf16 %v1425_v34, %v1423_v44  ;;  %v1291_v47 = vpop.f32.mrb[48].mxu0  ;;  %v1331_v48 = vpop.f32.mrb[32].mxu1  ;;  %3727 = vmatpush3.bf16.msra.mxu1 %v4262_v40  ;;  %3839 = vmatpush3.bf16.msra.mxu0 %v4264_v32 }
 0x308   : > { %v1292_v51 = vadd.f32 %v1291_v47, %v4816_v20  ;;  %v1293_v52 = vpop.f32.mrb[49].mxu0  ;;  %v1332_v39 = vadd.f32 %v1331_v48, %v4816_v20  ;;  %v1333_v35 = vpop.f32.mrb[33].mxu1  ;;  %3728 = vmatprep.subr.bf16.mxu1 %v4265_v33  ;;  %3840 = vmatprep.subr.bf16.mxu0 %v4267_v43 }
 0x309   : > { %v1294_v55 = vadd.f32 %v1293_v52, %v4820_v21  ;;  %v1295_v56 = vpop.f32.mrb[50].mxu0  ;;  %1974 = vmatprep.mubr.bf16.mxu1 %v1481_v46  ;;  %2167 = vmatprep.mubr.bf16.mxu0 %v1481_v46  ;;  %v1334_v57 = vadd.f32 %v1333_v35, %v4820_v21  ;;  %v1335_v26 = vpop.f32.mrb[34].mxu1 }
 0x30a   : > { %v1296_v58 = vadd.f32 %v1295_v56, %v4816_v20  ;;  %v1297_v59 = vpop.f32.mrb[51].mxu0  ;;  %1975 = vmatmul.mubr.bf16.gmra.mrb[76].mxu1 %v1480_v45  ;;  %2168 = vmatmul.mubr.bf16.gmra.mrb[76].mxu0 %v1480_v45  ;;  %v1442_v60 = vmax.f32 %v1332_v39, 0.0  ;;  %v1336_v61 = vadd.f32 %v1335_v26, %v4816_v20  ;;  %v1337_v62 = vpop.f32.mrb[35].mxu1  ;;  %v1426_v3 = vmax.f32 %v1292_v51, 0.0 }
 0x30b   : > { %v1298_v37 = vadd.f32 %v1297_v59, %v4820_v21  ;;  %v1443_v63 = vmax.f32 %v1334_v57, 0.0  ;;  %v1338_v0 = vadd.f32 %v1337_v62, %v4820_v21  ;;  %3729 = vmatpush3.bf16.msra.mxu1 %v4266_v49  ;;  %3841 = vmatpush3.bf16.msra.mxu0 %v4268_v50  ;;  %v1427_v6 = vmax.f32 %v1294_v55, 0.0 }
 0x30c   : > { %v1428_v4 = vmax.f32 %v1296_v58, 0.0  ;;  %v1444_v5 = vmax.f32 %v1336_v61, 0.0  ;;  %3730 = vmatprep.subr.bf16.mxu1 %v4269_v53  ;;  %3842 = vmatprep.subr.bf16.mxu0 %v4271_v54 }
 0x30d   : > { %v1429_v7 = vmax.f32 %v1298_v37, 0.0  ;;  %v1445_v8 = vmax.f32 %v1338_v0, 0.0 }
 0x30e   : > { %v1482_v9 = vpack.c.bf16 %v1428_v4, %v1426_v3  ;;  %v4936_v10 = vpack.c.bf16 %v1444_v5, %v1442_v60 }
 0x30f   : > { %v1483_v11 = vpack.c.bf16 %v1429_v7, %v1427_v6  ;;  %v1301_v13 = vpop.f32.mrb[52].mxu0  ;;  %v4938_v24 = vpack.c.bf16 %v1445_v8, %v1443_v63  ;;  %v1341_v14 = vpop.f32.mrb[36].mxu1  ;;  %3731 = vmatpush3.bf16.msra.mxu1 %v4270_v1  ;;  %3843 = vmatpush3.bf16.msra.mxu0 %v4272_v2 }
 0x310   : > { %v1302_v15 = vadd.f32 %v1301_v13, %v4816_v20  ;;  %v1303_v18 = vpop.f32.mrb[53].mxu0  ;;  %v1342_v22 = vadd.f32 %v1341_v14, %v4816_v20  ;;  %v1343_v23 = vpop.f32.mrb[37].mxu1 }
 0x311   : > { %v1304_v36 = vadd.f32 %v1303_v18, %v4820_v21  ;;  %v1305_v25 = vpop.f32.mrb[54].mxu0  ;;  %1984 = vmatprep.mubr.bf16.mxu1 %v1483_v11  ;;  %2177 = vmatprep.mubr.bf16.mxu0 %v1483_v11  ;;  %v1344_v27 = vadd.f32 %v1343_v23, %v4820_v21  ;;  %v1345_v12 = vpop.f32.mrb[38].mxu1 }
 0x312   : > { %v1306_v28 = vadd.f32 %v1305_v25, %v4816_v20  ;;  %v1307_v29 = vpop.f32.mrb[55].mxu0  ;;  %1985 = vmatmul.mubr.bf16.gmra.mrb[80].mxu1 %v1482_v9  ;;  %2178 = vmatmul.mubr.bf16.gmra.mrb[80].mxu0 %v1482_v9  ;;  %v1446_v30 = vmax.f32 %v1342_v22, 0.0  ;;  %v1346_v38 = vadd.f32 %v1345_v12, %v4816_v20  ;;  %v1347_v31 = vpop.f32.mrb[39].mxu1  ;;  %v1430_v42 = vmax.f32 %v1302_v15, 0.0 }
 0x313   : > { %v1308_v40 = vadd.f32 %v1307_v29, %v4820_v21  ;;  %v1447_v32 = vmax.f32 %v1344_v27, 0.0  ;;  %v1348_v41 = vadd.f32 %v1347_v31, %v4820_v21  ;;  %v1431_v44 = vmax.f32 %v1304_v36, 0.0 }
 0x314   : > { %v1432_v33 = vmax.f32 %v1306_v28, 0.0  ;;  %v1448_v43 = vmax.f32 %v1346_v38, 0.0 }
 0x315   : > { %v1433_v34 = vmax.f32 %v1308_v40, 0.0  ;;  %v1449_v45 = vmax.f32 %v1348_v41, 0.0 }
 0x316   : > { %v1484_v46 = vpack.c.bf16 %v1432_v33, %v1430_v42  ;;  %v4948_v47 = vpack.c.bf16 %v1448_v43, %v1446_v30 }
 0x317   : > { %v1485_v48 = vpack.c.bf16 %v1433_v34, %v1431_v44  ;;  %v1311_v49 = vpop.f32.mrb[56].mxu0  ;;  %v4950_v50 = vpack.c.bf16 %v1449_v45, %v1447_v32  ;;  %v1351_v51 = vpop.f32.mrb[40].mxu1 }
 0x318   : > { %v1312_v52 = vadd.f32 %v1311_v49, %v4816_v20  ;;  %v1313_v39 = vpop.f32.mrb[57].mxu0  ;;  %v1352_v35 = vadd.f32 %v1351_v51, %v4816_v20  ;;  %v1353_v53 = vpop.f32.mrb[41].mxu1 }
 0x319   : > { %v1314_v54 = vadd.f32 %v1313_v39, %v4820_v21  ;;  %v1315_v55 = vpop.f32.mrb[58].mxu0  ;;  %1994 = vmatprep.mubr.bf16.mxu1 %v1485_v48  ;;  %2187 = vmatprep.mubr.bf16.mxu0 %v1485_v48  ;;  %v1354_v56 = vadd.f32 %v1353_v53, %v4820_v21  ;;  %v1355_v57 = vpop.f32.mrb[42].mxu1 }
 0x31a   : > { %v1316_v26 = vadd.f32 %v1315_v55, %v4816_v20  ;;  %v1317_v58 = vpop.f32.mrb[59].mxu0  ;;  %1995 = vmatmul.mubr.bf16.gmra.mrb[84].mxu1 %v1484_v46  ;;  %2188 = vmatmul.mubr.bf16.gmra.mrb[84].mxu0 %v1484_v46  ;;  %v1450_v59 = vmax.f32 %v1352_v35, 0.0  ;;  %v1356_v60 = vadd.f32 %v1355_v57, %v4816_v20  ;;  %v1357_v61 = vpop.f32.mrb[43].mxu1  ;;  %v1434_v0 = vmax.f32 %v1312_v52, 0.0 }
 0x31b   : > { %v1318_v62 = vadd.f32 %v1317_v58, %v4820_v21  ;;  %v1451_v37 = vmax.f32 %v1354_v56, 0.0  ;;  %v1358_v63 = vadd.f32 %v1357_v61, %v4820_v21  ;;  %v1435_v3 = vmax.f32 %v1314_v54, 0.0 }
 0x31c   : > { %v1436_v1 = vmax.f32 %v1316_v26, 0.0  ;;  %v1452_v2 = vmax.f32 %v1356_v60, 0.0 }
 0x31d   : > { %v1437_v4 = vmax.f32 %v1318_v62, 0.0  ;;  %v1453_v5 = vmax.f32 %v1358_v63, 0.0 }
 0x31e   : > { %v1486_v6 = vpack.c.bf16 %v1436_v1, %v1434_v0  ;;  %v4960_v7 = vpack.c.bf16 %v1452_v2, %v1450_v59 }
 0x31f   : > { %v1487_v8 = vpack.c.bf16 %v1437_v4, %v1435_v3  ;;  %v1321_v9 = vpop.f32.mrb[60].mxu0  ;;  %v4962_v11 = vpack.c.bf16 %v1453_v5, %v1451_v37  ;;  %v1361_v13 = vpop.f32.mrb[44].mxu1 }
 0x320   : > { %v1322_v14 = vadd.f32 %v1321_v9, %v4816_v20  ;;  %v1323_v15 = vpop.f32.mrb[61].mxu0  ;;  %v1362_v18 = vadd.f32 %v1361_v13, %v4816_v20  ;;  %v1363_v22 = vpop.f32.mrb[45].mxu1 }
 0x321   : > { %v1324_v23 = vadd.f32 %v1323_v15, %v4820_v21  ;;  %v1325_v36 = vpop.f32.mrb[62].mxu0  ;;  %2004 = vmatprep.mubr.bf16.mxu1 %v1487_v8  ;;  %2197 = vmatprep.mubr.bf16.mxu0 %v1487_v8  ;;  %v1364_v25 = vadd.f32 %v1363_v22, %v4820_v21  ;;  %v1365_v27 = vpop.f32.mrb[46].mxu1 }
 0x322   : > { %v1326_v12 = vadd.f32 %v1325_v36, %v4816_v20  ;;  %v1327_v28 = vpop.f32.mrb[63].mxu0  ;;  %2005 = vmatmul.mubr.bf16.gmra.mrb[88].mxu1 %v1486_v6  ;;  %2198 = vmatmul.mubr.bf16.gmra.mrb[88].mxu0 %v1486_v6  ;;  %v1454_v29 = vmax.f32 %v1362_v18, 0.0  ;;  %v1366_v30 = vadd.f32 %v1365_v27, %v4816_v20  ;;  %v1367_v38 = vpop.f32.mrb[47].mxu1  ;;  %v1438_v41 = vmax.f32 %v1322_v14, 0.0 }
 0x323   : > { %v1328_v31 = vadd.f32 %v1327_v28, %v4820_v21  ;;  %v1455_v40 = vmax.f32 %v1364_v25, 0.0  ;;  %v1368_v32 = vadd.f32 %v1367_v38, %v4820_v21  ;;  %v1439_v43 = vmax.f32 %v1324_v23, 0.0 }
 0x324   : > { %v1440_v42 = vmax.f32 %v1326_v12, 0.0  ;;  %v1456_v33 = vmax.f32 %v1366_v30, 0.0 }
 0x325   : > { %v1441_v44 = vmax.f32 %v1328_v31, 0.0  ;;  %v1457_v34 = vmax.f32 %v1368_v32, 0.0 }
 0x326   : > { %v1488_v45 = vpack.c.bf16 %v1440_v42, %v1438_v41  ;;  %v4972_v46 = vpack.c.bf16 %v1456_v33, %v1454_v29 }
 0x327   : > { %v1489_v48 = vpack.c.bf16 %v1441_v44, %v1439_v43  ;;  %v4974_v49 = vpack.c.bf16 %v1457_v34, %v1455_v40  ;;  %v1371_v51 = vpop.f32.mrb[48].mxu1 }
 0x328   : > { %v1372_v52 = vadd.f32 %v1371_v51, %v4816_v20  ;;  %v1373_v39 = vpop.f32.mrb[49].mxu1 }
 0x329   : > { %2014 = vmatprep.mubr.bf16.mxu1 %v1489_v48  ;;  %2207 = vmatprep.mubr.bf16.mxu0 %v1489_v48  ;;  %v1374_v35 = vadd.f32 %v1373_v39, %v4820_v21  ;;  %v1375_v53 = vpop.f32.mrb[50].mxu1 }
 0x32a   : > { %2015 = vmatmul.mubr.bf16.gmra.mrb[92].mxu1 %v1488_v45  ;;  %2208 = vmatmul.mubr.bf16.gmra.mrb[92].mxu0 %v1488_v45  ;;  %v1458_v54 = vmax.f32 %v1372_v52, 0.0  ;;  %v1376_v55 = vadd.f32 %v1375_v53, %v4816_v20  ;;  %v1377_v56 = vpop.f32.mrb[51].mxu1 }
 0x32b   : > { %2024 = vmatprep.mubr.bf16.mxu1 %v4938_v24  ;;  %2217 = vmatprep.mubr.bf16.mxu0 %v4938_v24  ;;  %v1459_v57 = vmax.f32 %v1374_v35, 0.0  ;;  %v1378_v26 = vadd.f32 %v1377_v56, %v4820_v21 }
 0x32c   : > { %v1460_v58 = vmax.f32 %v1376_v55, 0.0 }
 0x32d   : > { %v1461_v59 = vmax.f32 %v1378_v26, 0.0 }
 0x32e   : > { %v1498_v60 = vpack.c.bf16 %v1460_v58, %v1458_v54 }
 0x32f   : > { %v1499_v61 = vpack.c.bf16 %v1461_v59, %v1459_v57  ;;  %v1381_v62 = vpop.f32.mrb[52].mxu1 }
 0x330   : > { %v1382_v37 = vadd.f32 %v1381_v62, %v4816_v20  ;;  %v1383_v63 = vpop.f32.mrb[53].mxu1 }
 0x331   : > { %v1384_v0 = vadd.f32 %v1383_v63, %v4820_v21  ;;  %v1385_v1 = vpop.f32.mrb[54].mxu1 }
 0x332   : > { %2025 = vmatmul.mubr.bf16.gmra.mrb[96].mxu1 %v4936_v10  ;;  %2218 = vmatmul.mubr.bf16.gmra.mrb[96].mxu0 %v4936_v10  ;;  %v1462_v2 = vmax.f32 %v1382_v37, 0.0  ;;  %v1386_v24 = vadd.f32 %v1385_v1, %v4816_v20  ;;  %v1387_v3 = vpop.f32.mrb[55].mxu1 }
 0x333   : > { %2034 = vmatprep.mubr.bf16.mxu1 %v4950_v50  ;;  %2227 = vmatprep.mubr.bf16.mxu0 %v4950_v50  ;;  %v1463_v4 = vmax.f32 %v1384_v0, 0.0  ;;  %v1388_v5 = vadd.f32 %v1387_v3, %v4820_v21 }
 0x334   : > { %v1464_v6 = vmax.f32 %v1386_v24, 0.0 }
 0x335   : > { %v1465_v8 = vmax.f32 %v1388_v5, 0.0 }
 0x336   : > { %v1500_v9 = vpack.c.bf16 %v1464_v6, %v1462_v2 }
 0x337   : > { %v1501_v13 = vpack.c.bf16 %v1465_v8, %v1463_v4  ;;  %v1391_v14 = vpop.f32.mrb[56].mxu1 }
 0x338   : > { %v1392_v15 = vadd.f32 %v1391_v14, %v4816_v20  ;;  %v1393_v18 = vpop.f32.mrb[57].mxu1 }
 0x339   : > { %v1394_v10 = vadd.f32 %v1393_v18, %v4820_v21  ;;  %v1395_v22 = vpop.f32.mrb[58].mxu1 }
 0x33a   : > { %2035 = vmatmul.mubr.bf16.gmra.mrb[100].mxu1 %v4948_v47  ;;  %2228 = vmatmul.mubr.bf16.gmra.mrb[100].mxu0 %v4948_v47  ;;  %v1466_v23 = vmax.f32 %v1392_v15, 0.0  ;;  %v1396_v50 = vadd.f32 %v1395_v22, %v4816_v20  ;;  %v1397_v36 = vpop.f32.mrb[59].mxu1 }
 0x33b   : > { %2044 = vmatprep.mubr.bf16.mxu1 %v4962_v11  ;;  %2237 = vmatprep.mubr.bf16.mxu0 %v4962_v11  ;;  %v1467_v25 = vmax.f32 %v1394_v10, 0.0  ;;  %v1398_v27 = vadd.f32 %v1397_v36, %v4820_v21 }
 0x33c   : > { %v1468_v12 = vmax.f32 %v1396_v50, 0.0 }
 0x33d   : > { %v1469_v28 = vmax.f32 %v1398_v27, 0.0 }
 0x33e   : > { %v1502_v29 = vpack.c.bf16 %v1468_v12, %v1466_v23 }
 0x33f   : > { %v1503_v30 = vpack.c.bf16 %v1469_v28, %v1467_v25  ;;  %v1401_v38 = vpop.f32.mrb[60].mxu1 }
 0x340   : > { %v1402_v31 = vadd.f32 %v1401_v38, %v4816_v20  ;;  %v1403_v40 = vpop.f32.mrb[61].mxu1 }
 0x341   : > { %v1404_v47 = vadd.f32 %v1403_v40, %v4820_v21  ;;  %v1405_v32 = vpop.f32.mrb[62].mxu1 }
 0x342   : > { %2045 = vmatmul.mubr.bf16.gmra.mrb[104].mxu1 %v4960_v7  ;;  %2238 = vmatmul.mubr.bf16.gmra.mrb[104].mxu0 %v4960_v7  ;;  %v1470_v41 = vmax.f32 %v1402_v31, 0.0  ;;  %v1406_v11 = vadd.f32 %v1405_v32, %v4816_v20  ;;  %v1407_v42 = vpop.f32.mrb[63].mxu1  ;;  %v1582_v20 = vsub.s32 2, %v4807_v16  ;;  %v1586_v7 = vsub.s32 3, %v4807_v16 }
 0x343   : > { %2054 = vmatprep.mubr.bf16.mxu1 %v4974_v49  ;;  %2247 = vmatprep.mubr.bf16.mxu0 %v4974_v49  ;;  %v1471_v33 = vmax.f32 %v1404_v47, 0.0  ;;  %v1408_v43 = vadd.f32 %v1407_v42, %v4820_v21  ;;  %v1570_v21 = vld [vmem:[%s5271_s8] sm:$0xf] }
 0x344   : > { %v1472_v44 = vmax.f32 %v1406_v11, 0.0  ;;  %v5017_v49 = vrot.slane %v1570_v21, %v1582_v20  ;;  %v5021_v51 = vrot.slane %v1570_v21, %v1133_v19  ;;  %v5023_v52 = vrot.slane %v1570_v21, %v1586_v7 }
 0x345   : > { %v1473_v34 = vmax.f32 %v1408_v43, 0.0 }
 0x346   : > { %v1504_v45 = vpack.c.bf16 %v1472_v44, %v1470_v41 }
 0x347   : > { %v1505_v48 = vpack.c.bf16 %v1473_v34, %v1471_v33 }
 0x34a   : > { %2055 = vmatmul.mubr.bf16.gmra.mrb[108].mxu1 %v4972_v46  ;;  %2248 = vmatmul.mubr.bf16.gmra.mrb[108].mxu0 %v4972_v46  ;;  %v5015_v46 = vrot.slane %v1570_v21, %v1129_v17 }
 0x34b   : > { %2064 = vmatprep.mubr.bf16.mxu1 %v1499_v61  ;;  %2257 = vmatprep.mubr.bf16.mxu0 %v1499_v61 }
 0x352   : > { %2065 = vmatmul.mubr.bf16.gmra.mrb[112].mxu1 %v1498_v60  ;;  %2258 = vmatmul.mubr.bf16.gmra.mrb[112].mxu0 %v1498_v60 }
 0x353   : > { %2074 = vmatprep.mubr.bf16.mxu1 %v1501_v13  ;;  %2267 = vmatprep.mubr.bf16.mxu0 %v1501_v13 }
 0x35a   : > { %2075 = vmatmul.mubr.bf16.gmra.mrb[116].mxu1 %v1500_v9  ;;  %2268 = vmatmul.mubr.bf16.gmra.mrb[116].mxu0 %v1500_v9 }
 0x35b   : > { %2084 = vmatprep.mubr.bf16.mxu1 %v1503_v30  ;;  %2277 = vmatprep.mubr.bf16.mxu0 %v1503_v30 }
 0x362   : > { %2085 = vmatmul.mubr.bf16.gmra.mrb[120].mxu1 %v1502_v29  ;;  %2278 = vmatmul.mubr.bf16.gmra.mrb[120].mxu0 %v1502_v29 }
 0x363   : > { %2094 = vmatprep.mubr.bf16.mxu1 %v1505_v48  ;;  %2287 = vmatprep.mubr.bf16.mxu0 %v1505_v48 }
 0x36a   : > { %2095 = vmatmul.mubr.bf16.gmra.mrb[124].mxu1 %v1504_v45  ;;  %2288 = vmatmul.mubr.bf16.gmra.mrb[124].mxu0 %v1504_v45 }
 0x3c5   : > { %v1946_v39 = vpop.f32.mrb[64].mxu1  ;;  %v2139_v35 = vpop.f32.mrb[64].mxu0 }
 0x3c6   : > { %v1947_v53 = vadd.f32 %v1946_v39, %v5015_v46  ;;  %v2140_v54 = vadd.f32 %v2139_v35, %v5017_v49  ;;  %v1948_v55 = vpop.f32.mrb[65].mxu1  ;;  %v2141_v56 = vpop.f32.mrb[65].mxu0 }
 0x3c7   : > { %v1949_v57 = vadd.f32 %v1948_v55, %v5021_v51  ;;  %v2142_v17 = vadd.f32 %v2141_v56, %v5023_v52  ;;  %v1950_v26 = vpop.f32.mrb[66].mxu1  ;;  %v2143_v58 = vpop.f32.mrb[66].mxu0 }
 0x3c8   : > { %v1951_v16 = vadd.f32 %v1950_v26, %v5015_v46  ;;  %v2144_v19 = vadd.f32 %v2143_v58, %v5017_v49  ;;  %v1952_v59 = vpop.f32.mrb[67].mxu1  ;;  %v2145_v60 = vpop.f32.mrb[67].mxu0  ;;  %v2298_v37 = vmax.f32 %v1947_v53, 0.0  ;;  %v2300_v63 = vmax.f32 %v2140_v54, 0.0 }
 0x3c9   : > { %v1953_v61 = vadd.f32 %v1952_v59, %v5021_v51  ;;  %v2146_v62 = vadd.f32 %v2145_v60, %v5023_v52  ;;  %v2299_v2 = vmax.f32 %v1949_v57, 0.0  ;;  %v2301_v24 = vmax.f32 %v2142_v17, 0.0 }
 0x3ca   : > { %v2302_v0 = vmax.f32 %v1951_v16, 0.0  ;;  %v2304_v1 = vmax.f32 %v2144_v19, 0.0 }
 0x3cb   : > { %v2303_v3 = vmax.f32 %v1953_v61, 0.0  ;;  %v2305_v4 = vmax.f32 %v2146_v62, 0.0 }
 0x3cc   : > { %v2426_v5 = vpack.c.bf16 %v2302_v0, %v2298_v37  ;;  %v2428_v6 = vpack.c.bf16 %v2304_v1, %v2300_v63 }
 0x3cd   : > { %v2427_v8 = vpack.c.bf16 %v2303_v3, %v2299_v2  ;;  %v2429_v9 = vpack.c.bf16 %v2305_v4, %v2301_v24  ;;  %v1956_v13 = vpop.f32.mrb[68].mxu1  ;;  %v2149_v14 = vpop.f32.mrb[68].mxu0 }
 0x3ce   : > { %v1957_v15 = vadd.f32 %v1956_v13, %v5015_v46  ;;  %v2150_v18 = vadd.f32 %v2149_v14, %v5017_v49  ;;  %v1958_v10 = vpop.f32.mrb[69].mxu1  ;;  %v2151_v22 = vpop.f32.mrb[69].mxu0 }
 0x3cf   : > { %v1959_v23 = vadd.f32 %v1958_v10, %v5021_v51  ;;  %v2152_v50 = vadd.f32 %v2151_v22, %v5023_v52  ;;  %v1960_v36 = vpop.f32.mrb[70].mxu1  ;;  %v2153_v25 = vpop.f32.mrb[70].mxu0  ;;  %2785 = vmatprep.mubr.bf16.mxu1 %v2427_v8  ;;  %2946 = vmatprep.mubr.bf16.mxu0 %v2429_v9 }
 0x3d0   : > { %v1961_v27 = vadd.f32 %v1960_v36, %v5015_v46  ;;  %v2154_v12 = vadd.f32 %v2153_v25, %v5017_v49  ;;  %v1962_v28 = vpop.f32.mrb[71].mxu1  ;;  %v2155_v29 = vpop.f32.mrb[71].mxu0  ;;  %2786 = vmatmul.mubr.bf16.vlgmr.msra.gmra.mrb[128].mxu1 %v2426_v5  ;;  %2947 = vmatmul.mubr.bf16.vlgmr.msra.gmra.mrb[128].mxu0 %v2428_v6  ;;  %v2306_v31 = vmax.f32 %v1957_v15, 0.0  ;;  %v2308_v40 = vmax.f32 %v2150_v18, 0.0 }
 0x3d1   : > { %v1963_v30 = vadd.f32 %v1962_v28, %v5021_v51  ;;  %v2156_v38 = vadd.f32 %v2155_v29, %v5023_v52  ;;  %v2307_v41 = vmax.f32 %v1959_v23, 0.0  ;;  %v2309_v11 = vmax.f32 %v2152_v50, 0.0 }
 0x3d2   : > { %v2310_v47 = vmax.f32 %v1961_v27, 0.0  ;;  %v2312_v32 = vmax.f32 %v2154_v12, 0.0 }
 0x3d3   : > { %v2311_v42 = vmax.f32 %v1963_v30, 0.0  ;;  %v2313_v33 = vmax.f32 %v2156_v38, 0.0 }
 0x3d4   : > { %v2430_v43 = vpack.c.bf16 %v2310_v47, %v2306_v31  ;;  %v2432_v44 = vpack.c.bf16 %v2312_v32, %v2308_v40 }
 0x3d5   : > { %v2431_v34 = vpack.c.bf16 %v2311_v42, %v2307_v41  ;;  %v2433_v45 = vpack.c.bf16 %v2313_v33, %v2309_v11  ;;  %v1966_v48 = vpop.f32.mrb[72].mxu1  ;;  %v2159_v20 = vpop.f32.mrb[72].mxu0 }
 0x3d6   : > { %v1967_v21 = vadd.f32 %v1966_v48, %v5015_v46  ;;  %v2160_v7 = vadd.f32 %v2159_v20, %v5017_v49  ;;  %v1968_v39 = vpop.f32.mrb[73].mxu1  ;;  %v2161_v35 = vpop.f32.mrb[73].mxu0 }
 0x3d7   : > { %v1969_v53 = vadd.f32 %v1968_v39, %v5021_v51  ;;  %v2162_v54 = vadd.f32 %v2161_v35, %v5023_v52  ;;  %v1970_v55 = vpop.f32.mrb[74].mxu1  ;;  %v2163_v56 = vpop.f32.mrb[74].mxu0  ;;  %2793 = vmatprep.mubr.bf16.mxu1 %v2431_v34  ;;  %2954 = vmatprep.mubr.bf16.mxu0 %v2433_v45 }
 0x3d8   : > { %v1971_v57 = vadd.f32 %v1970_v55, %v5015_v46  ;;  %v2164_v17 = vadd.f32 %v2163_v56, %v5017_v49  ;;  %v1972_v26 = vpop.f32.mrb[75].mxu1  ;;  %v2165_v58 = vpop.f32.mrb[75].mxu0  ;;  %2794 = vmatmul.mubr.bf16.gmra.mrb[132].mxu1 %v2430_v43  ;;  %2955 = vmatmul.mubr.bf16.gmra.mrb[132].mxu0 %v2432_v44  ;;  %v2314_v59 = vmax.f32 %v1967_v21, 0.0  ;;  %v2316_v60 = vmax.f32 %v2160_v7, 0.0 }
 0x3d9   : > { %v1973_v16 = vadd.f32 %v1972_v26, %v5021_v51  ;;  %v2166_v19 = vadd.f32 %v2165_v58, %v5023_v52  ;;  %v2315_v37 = vmax.f32 %v1969_v53, 0.0  ;;  %v2317_v63 = vmax.f32 %v2162_v54, 0.0 }
 0x3da   : > { %v2318_v61 = vmax.f32 %v1971_v57, 0.0  ;;  %v2320_v62 = vmax.f32 %v2164_v17, 0.0 }
 0x3db   : > { %v2319_v0 = vmax.f32 %v1973_v16, 0.0  ;;  %v2321_v1 = vmax.f32 %v2166_v19, 0.0 }
 0x3dc   : > { %v2434_v2 = vpack.c.bf16 %v2318_v61, %v2314_v59  ;;  %v2436_v24 = vpack.c.bf16 %v2320_v62, %v2316_v60 }
 0x3dd   : > { %v2435_v3 = vpack.c.bf16 %v2319_v0, %v2315_v37  ;;  %v2437_v4 = vpack.c.bf16 %v2321_v1, %v2317_v63  ;;  %v1976_v5 = vpop.f32.mrb[76].mxu1  ;;  %v2169_v6 = vpop.f32.mrb[76].mxu0 }
 0x3de   : > { %v1977_v8 = vadd.f32 %v1976_v5, %v5015_v46  ;;  %v2170_v9 = vadd.f32 %v2169_v6, %v5017_v49  ;;  %v1978_v13 = vpop.f32.mrb[77].mxu1  ;;  %v2171_v14 = vpop.f32.mrb[77].mxu0 }
 0x3df   : > { %v1979_v15 = vadd.f32 %v1978_v13, %v5021_v51  ;;  %v2172_v18 = vadd.f32 %v2171_v14, %v5023_v52  ;;  %v1980_v10 = vpop.f32.mrb[78].mxu1  ;;  %v2173_v22 = vpop.f32.mrb[78].mxu0  ;;  %2801 = vmatprep.mubr.bf16.mxu1 %v2435_v3  ;;  %2962 = vmatprep.mubr.bf16.mxu0 %v2437_v4 }
 0x3e0   : > { %v1981_v23 = vadd.f32 %v1980_v10, %v5015_v46  ;;  %v2174_v50 = vadd.f32 %v2173_v22, %v5017_v49  ;;  %v1982_v36 = vpop.f32.mrb[79].mxu1  ;;  %v2175_v25 = vpop.f32.mrb[79].mxu0  ;;  %2802 = vmatmul.mubr.bf16.gmra.mrb[136].mxu1 %v2434_v2  ;;  %2963 = vmatmul.mubr.bf16.gmra.mrb[136].mxu0 %v2436_v24  ;;  %v2322_v28 = vmax.f32 %v1977_v8, 0.0  ;;  %v2324_v29 = vmax.f32 %v2170_v9, 0.0 }
 0x3e1   : > { %v1983_v27 = vadd.f32 %v1982_v36, %v5021_v51  ;;  %v2176_v12 = vadd.f32 %v2175_v25, %v5023_v52  ;;  %v2323_v31 = vmax.f32 %v1979_v15, 0.0  ;;  %v2325_v40 = vmax.f32 %v2172_v18, 0.0 }
 0x3e2   : > { %v2326_v30 = vmax.f32 %v1981_v23, 0.0  ;;  %v2328_v38 = vmax.f32 %v2174_v50, 0.0 }
 0x3e3   : > { %v2327_v47 = vmax.f32 %v1983_v27, 0.0  ;;  %v2329_v32 = vmax.f32 %v2176_v12, 0.0 }
 0x3e4   : > { %v2438_v41 = vpack.c.bf16 %v2326_v30, %v2322_v28  ;;  %v2440_v11 = vpack.c.bf16 %v2328_v38, %v2324_v29 }
 0x3e5   : > { %v2439_v42 = vpack.c.bf16 %v2327_v47, %v2323_v31  ;;  %v2441_v33 = vpack.c.bf16 %v2329_v32, %v2325_v40  ;;  %v1986_v43 = vpop.f32.mrb[80].mxu1  ;;  %v2179_v44 = vpop.f32.mrb[80].mxu0 }
 0x3e6   : > { %v1987_v34 = vadd.f32 %v1986_v43, %v5015_v46  ;;  %v2180_v45 = vadd.f32 %v2179_v44, %v5017_v49  ;;  %v1988_v48 = vpop.f32.mrb[81].mxu1  ;;  %v2181_v20 = vpop.f32.mrb[81].mxu0 }
 0x3e7   : > { %v1989_v21 = vadd.f32 %v1988_v48, %v5021_v51  ;;  %v2182_v7 = vadd.f32 %v2181_v20, %v5023_v52  ;;  %v1990_v39 = vpop.f32.mrb[82].mxu1  ;;  %v2183_v35 = vpop.f32.mrb[82].mxu0  ;;  %2809 = vmatprep.mubr.bf16.mxu1 %v2439_v42  ;;  %2970 = vmatprep.mubr.bf16.mxu0 %v2441_v33 }
 0x3e8   : > { %v1991_v53 = vadd.f32 %v1990_v39, %v5015_v46  ;;  %v2184_v54 = vadd.f32 %v2183_v35, %v5017_v49  ;;  %v1992_v55 = vpop.f32.mrb[83].mxu1  ;;  %v2185_v56 = vpop.f32.mrb[83].mxu0  ;;  %2810 = vmatmul.mubr.bf16.gmra.mrb[140].mxu1 %v2438_v41  ;;  %2971 = vmatmul.mubr.bf16.gmra.mrb[140].mxu0 %v2440_v11  ;;  %v2330_v26 = vmax.f32 %v1987_v34, 0.0  ;;  %v2332_v58 = vmax.f32 %v2180_v45, 0.0 }
 0x3e9   : > { %v1993_v57 = vadd.f32 %v1992_v55, %v5021_v51  ;;  %v2186_v17 = vadd.f32 %v2185_v56, %v5023_v52  ;;  %v2331_v59 = vmax.f32 %v1989_v21, 0.0  ;;  %v2333_v60 = vmax.f32 %v2182_v7, 0.0 }
 0x3ea   : > { %v2334_v16 = vmax.f32 %v1991_v53, 0.0  ;;  %v2336_v19 = vmax.f32 %v2184_v54, 0.0 }
 0x3eb   : > { %v2335_v61 = vmax.f32 %v1993_v57, 0.0  ;;  %v2337_v62 = vmax.f32 %v2186_v17, 0.0 }
 0x3ec   : > { %v2442_v37 = vpack.c.bf16 %v2334_v16, %v2330_v26  ;;  %v2444_v63 = vpack.c.bf16 %v2336_v19, %v2332_v58 }
 0x3ed   : > { %v2443_v0 = vpack.c.bf16 %v2335_v61, %v2331_v59  ;;  %v2445_v1 = vpack.c.bf16 %v2337_v62, %v2333_v60  ;;  %v1996_v2 = vpop.f32.mrb[84].mxu1  ;;  %v2189_v24 = vpop.f32.mrb[84].mxu0 }
 0x3ee   : > { %v1997_v3 = vadd.f32 %v1996_v2, %v5015_v46  ;;  %v2190_v4 = vadd.f32 %v2189_v24, %v5017_v49  ;;  %v1998_v5 = vpop.f32.mrb[85].mxu1  ;;  %v2191_v6 = vpop.f32.mrb[85].mxu0 }
 0x3ef   : > { %v1999_v8 = vadd.f32 %v1998_v5, %v5021_v51  ;;  %v2192_v9 = vadd.f32 %v2191_v6, %v5023_v52  ;;  %v2000_v13 = vpop.f32.mrb[86].mxu1  ;;  %v2193_v14 = vpop.f32.mrb[86].mxu0  ;;  %2817 = vmatprep.mubr.bf16.mxu1 %v2443_v0  ;;  %2978 = vmatprep.mubr.bf16.mxu0 %v2445_v1 }
 0x3f0   : > { %v2001_v15 = vadd.f32 %v2000_v13, %v5015_v46  ;;  %v2194_v18 = vadd.f32 %v2193_v14, %v5017_v49  ;;  %v2002_v10 = vpop.f32.mrb[87].mxu1  ;;  %v2195_v22 = vpop.f32.mrb[87].mxu0  ;;  %2818 = vmatmul.mubr.bf16.gmra.mrb[144].mxu1 %v2442_v37  ;;  %2979 = vmatmul.mubr.bf16.gmra.mrb[144].mxu0 %v2444_v63  ;;  %v2338_v36 = vmax.f32 %v1997_v3, 0.0  ;;  %v2340_v25 = vmax.f32 %v2190_v4, 0.0 }
 0x3f1   : > { %v2003_v23 = vadd.f32 %v2002_v10, %v5021_v51  ;;  %v2196_v50 = vadd.f32 %v2195_v22, %v5023_v52  ;;  %v2339_v28 = vmax.f32 %v1999_v8, 0.0  ;;  %v2341_v29 = vmax.f32 %v2192_v9, 0.0 }
 0x3f2   : > { %v2342_v27 = vmax.f32 %v2001_v15, 0.0  ;;  %v2344_v12 = vmax.f32 %v2194_v18, 0.0 }
 0x3f3   : > { %v2343_v30 = vmax.f32 %v2003_v23, 0.0  ;;  %v2345_v38 = vmax.f32 %v2196_v50, 0.0 }
 0x3f4   : > { %v2446_v31 = vpack.c.bf16 %v2342_v27, %v2338_v36  ;;  %v2448_v40 = vpack.c.bf16 %v2344_v12, %v2340_v25 }
 0x3f5   : > { %v2447_v47 = vpack.c.bf16 %v2343_v30, %v2339_v28  ;;  %v2449_v32 = vpack.c.bf16 %v2345_v38, %v2341_v29  ;;  %v2006_v41 = vpop.f32.mrb[88].mxu1  ;;  %v2199_v11 = vpop.f32.mrb[88].mxu0 }
 0x3f6   : > { %v2007_v42 = vadd.f32 %v2006_v41, %v5015_v46  ;;  %v2200_v33 = vadd.f32 %v2199_v11, %v5017_v49  ;;  %v2008_v43 = vpop.f32.mrb[89].mxu1  ;;  %v2201_v44 = vpop.f32.mrb[89].mxu0 }
 0x3f7   : > { %v2009_v34 = vadd.f32 %v2008_v43, %v5021_v51  ;;  %v2202_v45 = vadd.f32 %v2201_v44, %v5023_v52  ;;  %v2010_v48 = vpop.f32.mrb[90].mxu1  ;;  %v2203_v20 = vpop.f32.mrb[90].mxu0  ;;  %2825 = vmatprep.mubr.bf16.mxu1 %v2447_v47  ;;  %2986 = vmatprep.mubr.bf16.mxu0 %v2449_v32 }
 0x3f8   : > { %v2011_v21 = vadd.f32 %v2010_v48, %v5015_v46  ;;  %v2204_v7 = vadd.f32 %v2203_v20, %v5017_v49  ;;  %v2012_v39 = vpop.f32.mrb[91].mxu1  ;;  %v2205_v35 = vpop.f32.mrb[91].mxu0  ;;  %2826 = vmatmul.mubr.bf16.gmra.mrb[148].mxu1 %v2446_v31  ;;  %2987 = vmatmul.mubr.bf16.gmra.mrb[148].mxu0 %v2448_v40  ;;  %v2346_v55 = vmax.f32 %v2007_v42, 0.0  ;;  %v2348_v56 = vmax.f32 %v2200_v33, 0.0 }
 0x3f9   : > { %v2013_v53 = vadd.f32 %v2012_v39, %v5021_v51  ;;  %v2206_v54 = vadd.f32 %v2205_v35, %v5023_v52  ;;  %v2347_v26 = vmax.f32 %v2009_v34, 0.0  ;;  %v2349_v58 = vmax.f32 %v2202_v45, 0.0 }
 0x3fa   : > { %v2350_v57 = vmax.f32 %v2011_v21, 0.0  ;;  %v2352_v17 = vmax.f32 %v2204_v7, 0.0 }
 0x3fb   : > { %v2351_v16 = vmax.f32 %v2013_v53, 0.0  ;;  %v2353_v19 = vmax.f32 %v2206_v54, 0.0 }
 0x3fc   : > { %v2450_v59 = vpack.c.bf16 %v2350_v57, %v2346_v55  ;;  %v2452_v60 = vpack.c.bf16 %v2352_v17, %v2348_v56 }
 0x3fd   : > { %v2451_v61 = vpack.c.bf16 %v2351_v16, %v2347_v26  ;;  %v2453_v62 = vpack.c.bf16 %v2353_v19, %v2349_v58  ;;  %v2016_v37 = vpop.f32.mrb[92].mxu1  ;;  %v2209_v63 = vpop.f32.mrb[92].mxu0 }
 0x3fe   : > { %v2017_v0 = vadd.f32 %v2016_v37, %v5015_v46  ;;  %v2210_v1 = vadd.f32 %v2209_v63, %v5017_v49  ;;  %v2018_v2 = vpop.f32.mrb[93].mxu1  ;;  %v2211_v24 = vpop.f32.mrb[93].mxu0 }
 0x3ff   : > { %v2019_v3 = vadd.f32 %v2018_v2, %v5021_v51  ;;  %v2212_v4 = vadd.f32 %v2211_v24, %v5023_v52  ;;  %v2020_v5 = vpop.f32.mrb[94].mxu1  ;;  %v2213_v6 = vpop.f32.mrb[94].mxu0  ;;  %2833 = vmatprep.mubr.bf16.mxu1 %v2451_v61  ;;  %2994 = vmatprep.mubr.bf16.mxu0 %v2453_v62 }
 0x400   : > { %v2021_v8 = vadd.f32 %v2020_v5, %v5015_v46  ;;  %v2214_v9 = vadd.f32 %v2213_v6, %v5017_v49  ;;  %v2022_v13 = vpop.f32.mrb[95].mxu1  ;;  %v2215_v14 = vpop.f32.mrb[95].mxu0  ;;  %2834 = vmatmul.mubr.bf16.gmra.mrb[152].mxu1 %v2450_v59  ;;  %2995 = vmatmul.mubr.bf16.gmra.mrb[152].mxu0 %v2452_v60  ;;  %v2354_v10 = vmax.f32 %v2017_v0, 0.0  ;;  %v2356_v22 = vmax.f32 %v2210_v1, 0.0 }
 0x401   : > { %v2023_v15 = vadd.f32 %v2022_v13, %v5021_v51  ;;  %v2216_v18 = vadd.f32 %v2215_v14, %v5023_v52  ;;  %v2355_v36 = vmax.f32 %v2019_v3, 0.0  ;;  %v2357_v25 = vmax.f32 %v2212_v4, 0.0 }
 0x402   : > { %v2358_v23 = vmax.f32 %v2021_v8, 0.0  ;;  %v2360_v50 = vmax.f32 %v2214_v9, 0.0 }
 0x403   : > { %v2359_v27 = vmax.f32 %v2023_v15, 0.0  ;;  %v2361_v12 = vmax.f32 %v2216_v18, 0.0 }
 0x404   : > { %v2454_v28 = vpack.c.bf16 %v2358_v23, %v2354_v10  ;;  %v2456_v29 = vpack.c.bf16 %v2360_v50, %v2356_v22 }
 0x405   : > { %v2455_v30 = vpack.c.bf16 %v2359_v27, %v2355_v36  ;;  %v2457_v38 = vpack.c.bf16 %v2361_v12, %v2357_v25  ;;  %v2026_v31 = vpop.f32.mrb[96].mxu1  ;;  %v2219_v40 = vpop.f32.mrb[96].mxu0 }
 0x406   : > { %v2027_v47 = vadd.f32 %v2026_v31, %v5015_v46  ;;  %v2220_v32 = vadd.f32 %v2219_v40, %v5017_v49  ;;  %v2028_v41 = vpop.f32.mrb[97].mxu1  ;;  %v2221_v11 = vpop.f32.mrb[97].mxu0 }
 0x407   : > { %v2029_v42 = vadd.f32 %v2028_v41, %v5021_v51  ;;  %v2222_v33 = vadd.f32 %v2221_v11, %v5023_v52  ;;  %v2030_v43 = vpop.f32.mrb[98].mxu1  ;;  %v2223_v44 = vpop.f32.mrb[98].mxu0  ;;  %2841 = vmatprep.mubr.bf16.mxu1 %v2455_v30  ;;  %3002 = vmatprep.mubr.bf16.mxu0 %v2457_v38 }
 0x408   : > { %v2031_v34 = vadd.f32 %v2030_v43, %v5015_v46  ;;  %v2224_v45 = vadd.f32 %v2223_v44, %v5017_v49  ;;  %v2032_v48 = vpop.f32.mrb[99].mxu1  ;;  %v2225_v20 = vpop.f32.mrb[99].mxu0  ;;  %2842 = vmatmul.mubr.bf16.gmra.mrb[156].mxu1 %v2454_v28  ;;  %3003 = vmatmul.mubr.bf16.gmra.mrb[156].mxu0 %v2456_v29  ;;  %v2362_v39 = vmax.f32 %v2027_v47, 0.0  ;;  %v2364_v35 = vmax.f32 %v2220_v32, 0.0 }
 0x409   : > { %v2033_v21 = vadd.f32 %v2032_v48, %v5021_v51  ;;  %v2226_v7 = vadd.f32 %v2225_v20, %v5023_v52  ;;  %v2363_v55 = vmax.f32 %v2029_v42, 0.0  ;;  %v2365_v56 = vmax.f32 %v2222_v33, 0.0 }
 0x40a   : > { %v2366_v53 = vmax.f32 %v2031_v34, 0.0  ;;  %v2368_v54 = vmax.f32 %v2224_v45, 0.0 }
 0x40b   : > { %v2367_v57 = vmax.f32 %v2033_v21, 0.0  ;;  %v2369_v17 = vmax.f32 %v2226_v7, 0.0 }
 0x40c   : > { %v2458_v26 = vpack.c.bf16 %v2366_v53, %v2362_v39  ;;  %v2460_v58 = vpack.c.bf16 %v2368_v54, %v2364_v35 }
 0x40d   : > { %v2459_v16 = vpack.c.bf16 %v2367_v57, %v2363_v55  ;;  %v2461_v19 = vpack.c.bf16 %v2369_v17, %v2365_v56  ;;  %v2036_v59 = vpop.f32.mrb[100].mxu1  ;;  %v2229_v60 = vpop.f32.mrb[100].mxu0 }
 0x40e   : > { %v2037_v61 = vadd.f32 %v2036_v59, %v5015_v46  ;;  %v2230_v62 = vadd.f32 %v2229_v60, %v5017_v49  ;;  %v2038_v37 = vpop.f32.mrb[101].mxu1  ;;  %v2231_v63 = vpop.f32.mrb[101].mxu0 }
 0x40f   : > { %v2039_v0 = vadd.f32 %v2038_v37, %v5021_v51  ;;  %v2232_v1 = vadd.f32 %v2231_v63, %v5023_v52  ;;  %v2040_v2 = vpop.f32.mrb[102].mxu1  ;;  %v2233_v24 = vpop.f32.mrb[102].mxu0  ;;  %2849 = vmatprep.mubr.bf16.mxu1 %v2459_v16  ;;  %3010 = vmatprep.mubr.bf16.mxu0 %v2461_v19 }
 0x410   : > { %v2041_v3 = vadd.f32 %v2040_v2, %v5015_v46  ;;  %v2234_v4 = vadd.f32 %v2233_v24, %v5017_v49  ;;  %v2042_v5 = vpop.f32.mrb[103].mxu1  ;;  %v2235_v6 = vpop.f32.mrb[103].mxu0  ;;  %2850 = vmatmul.mubr.bf16.gmra.mrb[160].mxu1 %v2458_v26  ;;  %3011 = vmatmul.mubr.bf16.gmra.mrb[160].mxu0 %v2460_v58  ;;  %v2370_v13 = vmax.f32 %v2037_v61, 0.0  ;;  %v2372_v14 = vmax.f32 %v2230_v62, 0.0 }
 0x411   : > { %v2043_v8 = vadd.f32 %v2042_v5, %v5021_v51  ;;  %v2236_v9 = vadd.f32 %v2235_v6, %v5023_v52  ;;  %v2371_v10 = vmax.f32 %v2039_v0, 0.0  ;;  %v2373_v22 = vmax.f32 %v2232_v1, 0.0 }
 0x412   : > { %v2374_v15 = vmax.f32 %v2041_v3, 0.0  ;;  %v2376_v18 = vmax.f32 %v2234_v4, 0.0 }
 0x413   : > { %v2375_v23 = vmax.f32 %v2043_v8, 0.0  ;;  %v2377_v50 = vmax.f32 %v2236_v9, 0.0 }
 0x414   : > { %v2462_v36 = vpack.c.bf16 %v2374_v15, %v2370_v13  ;;  %v2464_v25 = vpack.c.bf16 %v2376_v18, %v2372_v14 }
 0x415   : > { %v2463_v27 = vpack.c.bf16 %v2375_v23, %v2371_v10  ;;  %v2465_v12 = vpack.c.bf16 %v2377_v50, %v2373_v22  ;;  %v2046_v28 = vpop.f32.mrb[104].mxu1  ;;  %v2239_v29 = vpop.f32.mrb[104].mxu0 }
 0x416   : > { %v2047_v30 = vadd.f32 %v2046_v28, %v5015_v46  ;;  %v2240_v38 = vadd.f32 %v2239_v29, %v5017_v49  ;;  %v2048_v31 = vpop.f32.mrb[105].mxu1  ;;  %v2241_v40 = vpop.f32.mrb[105].mxu0 }
 0x417   : > { %v2049_v47 = vadd.f32 %v2048_v31, %v5021_v51  ;;  %v2242_v32 = vadd.f32 %v2241_v40, %v5023_v52  ;;  %v2050_v41 = vpop.f32.mrb[106].mxu1  ;;  %v2243_v11 = vpop.f32.mrb[106].mxu0  ;;  %2857 = vmatprep.mubr.bf16.mxu1 %v2463_v27  ;;  %3018 = vmatprep.mubr.bf16.mxu0 %v2465_v12 }
 0x418   : > { %v2051_v42 = vadd.f32 %v2050_v41, %v5015_v46  ;;  %v2244_v33 = vadd.f32 %v2243_v11, %v5017_v49  ;;  %v2052_v43 = vpop.f32.mrb[107].mxu1  ;;  %v2245_v44 = vpop.f32.mrb[107].mxu0  ;;  %2858 = vmatmul.mubr.bf16.gmra.mrb[164].mxu1 %v2462_v36  ;;  %3019 = vmatmul.mubr.bf16.gmra.mrb[164].mxu0 %v2464_v25  ;;  %v2378_v48 = vmax.f32 %v2047_v30, 0.0  ;;  %v2380_v20 = vmax.f32 %v2240_v38, 0.0 }
 0x419   : > { %v2053_v34 = vadd.f32 %v2052_v43, %v5021_v51  ;;  %v2246_v45 = vadd.f32 %v2245_v44, %v5023_v52  ;;  %v2379_v39 = vmax.f32 %v2049_v47, 0.0  ;;  %v2381_v35 = vmax.f32 %v2242_v32, 0.0 }
 0x41a   : > { %v2382_v21 = vmax.f32 %v2051_v42, 0.0  ;;  %v2384_v7 = vmax.f32 %v2244_v33, 0.0 }
 0x41b   : > { %v2383_v53 = vmax.f32 %v2053_v34, 0.0  ;;  %v2385_v54 = vmax.f32 %v2246_v45, 0.0 }
 0x41c   : > { %v2466_v55 = vpack.c.bf16 %v2382_v21, %v2378_v48  ;;  %v2468_v56 = vpack.c.bf16 %v2384_v7, %v2380_v20 }
 0x41d   : > { %v2467_v57 = vpack.c.bf16 %v2383_v53, %v2379_v39  ;;  %v2469_v17 = vpack.c.bf16 %v2385_v54, %v2381_v35  ;;  %v2056_v26 = vpop.f32.mrb[108].mxu1  ;;  %v2249_v58 = vpop.f32.mrb[108].mxu0 }
 0x41e   : > { %v2057_v16 = vadd.f32 %v2056_v26, %v5015_v46  ;;  %v2250_v19 = vadd.f32 %v2249_v58, %v5017_v49  ;;  %v2058_v59 = vpop.f32.mrb[109].mxu1  ;;  %v2251_v60 = vpop.f32.mrb[109].mxu0 }
 0x41f   : > { %v2059_v61 = vadd.f32 %v2058_v59, %v5021_v51  ;;  %v2252_v62 = vadd.f32 %v2251_v60, %v5023_v52  ;;  %v2060_v37 = vpop.f32.mrb[110].mxu1  ;;  %v2253_v63 = vpop.f32.mrb[110].mxu0  ;;  %2865 = vmatprep.mubr.bf16.mxu1 %v2467_v57  ;;  %3026 = vmatprep.mubr.bf16.mxu0 %v2469_v17 }
 0x420   : > { %v2061_v0 = vadd.f32 %v2060_v37, %v5015_v46  ;;  %v2254_v1 = vadd.f32 %v2253_v63, %v5017_v49  ;;  %v2062_v2 = vpop.f32.mrb[111].mxu1  ;;  %v2255_v24 = vpop.f32.mrb[111].mxu0  ;;  %2866 = vmatmul.mubr.bf16.gmra.mrb[168].mxu1 %v2466_v55  ;;  %3027 = vmatmul.mubr.bf16.gmra.mrb[168].mxu0 %v2468_v56  ;;  %v2386_v5 = vmax.f32 %v2057_v16, 0.0  ;;  %v2388_v6 = vmax.f32 %v2250_v19, 0.0 }
 0x421   : > { %v2063_v3 = vadd.f32 %v2062_v2, %v5021_v51  ;;  %v2256_v4 = vadd.f32 %v2255_v24, %v5023_v52  ;;  %v2387_v13 = vmax.f32 %v2059_v61, 0.0  ;;  %v2389_v14 = vmax.f32 %v2252_v62, 0.0 }
 0x422   : > { %v2390_v8 = vmax.f32 %v2061_v0, 0.0  ;;  %v2392_v9 = vmax.f32 %v2254_v1, 0.0 }
 0x423   : > { %v2391_v15 = vmax.f32 %v2063_v3, 0.0  ;;  %v2393_v18 = vmax.f32 %v2256_v4, 0.0 }
 0x424   : > { %v2470_v10 = vpack.c.bf16 %v2390_v8, %v2386_v5  ;;  %v2472_v22 = vpack.c.bf16 %v2392_v9, %v2388_v6 }
 0x425   : > { %v2471_v23 = vpack.c.bf16 %v2391_v15, %v2387_v13  ;;  %v2473_v50 = vpack.c.bf16 %v2393_v18, %v2389_v14  ;;  %v2066_v36 = vpop.f32.mrb[112].mxu1  ;;  %v2259_v25 = vpop.f32.mrb[112].mxu0 }
 0x426   : > { %v2067_v27 = vadd.f32 %v2066_v36, %v5015_v46  ;;  %v2260_v12 = vadd.f32 %v2259_v25, %v5017_v49  ;;  %v2068_v28 = vpop.f32.mrb[113].mxu1  ;;  %v2261_v29 = vpop.f32.mrb[113].mxu0 }
 0x427   : > { %v2069_v30 = vadd.f32 %v2068_v28, %v5021_v51  ;;  %v2262_v38 = vadd.f32 %v2261_v29, %v5023_v52  ;;  %v2070_v31 = vpop.f32.mrb[114].mxu1  ;;  %v2263_v40 = vpop.f32.mrb[114].mxu0  ;;  %2873 = vmatprep.mubr.bf16.mxu1 %v2471_v23  ;;  %3034 = vmatprep.mubr.bf16.mxu0 %v2473_v50 }
 0x428   : > { %v2071_v47 = vadd.f32 %v2070_v31, %v5015_v46  ;;  %v2264_v32 = vadd.f32 %v2263_v40, %v5017_v49  ;;  %v2072_v41 = vpop.f32.mrb[115].mxu1  ;;  %v2265_v11 = vpop.f32.mrb[115].mxu0  ;;  %2874 = vmatmul.mubr.bf16.gmra.mrb[172].mxu1 %v2470_v10  ;;  %3035 = vmatmul.mubr.bf16.gmra.mrb[172].mxu0 %v2472_v22  ;;  %v2394_v43 = vmax.f32 %v2067_v27, 0.0  ;;  %v2396_v44 = vmax.f32 %v2260_v12, 0.0 }
 0x429   : > { %v2073_v42 = vadd.f32 %v2072_v41, %v5021_v51  ;;  %v2266_v33 = vadd.f32 %v2265_v11, %v5023_v52  ;;  %v2395_v48 = vmax.f32 %v2069_v30, 0.0  ;;  %v2397_v20 = vmax.f32 %v2262_v38, 0.0 }
 0x42a   : > { %v2398_v34 = vmax.f32 %v2071_v47, 0.0  ;;  %v2400_v45 = vmax.f32 %v2264_v32, 0.0 }
 0x42b   : > { %v2399_v21 = vmax.f32 %v2073_v42, 0.0  ;;  %v2401_v7 = vmax.f32 %v2266_v33, 0.0 }
 0x42c   : > { %v2474_v39 = vpack.c.bf16 %v2398_v34, %v2394_v43  ;;  %v2476_v35 = vpack.c.bf16 %v2400_v45, %v2396_v44 }
 0x42d   : > { %v2475_v53 = vpack.c.bf16 %v2399_v21, %v2395_v48  ;;  %v2477_v54 = vpack.c.bf16 %v2401_v7, %v2397_v20  ;;  %v2076_v55 = vpop.f32.mrb[116].mxu1  ;;  %v2269_v56 = vpop.f32.mrb[116].mxu0 }
 0x42e   : > { %v2077_v57 = vadd.f32 %v2076_v55, %v5015_v46  ;;  %v2270_v17 = vadd.f32 %v2269_v56, %v5017_v49  ;;  %v2078_v26 = vpop.f32.mrb[117].mxu1  ;;  %v2271_v58 = vpop.f32.mrb[117].mxu0 }
 0x42f   : > { %v2079_v16 = vadd.f32 %v2078_v26, %v5021_v51  ;;  %v2272_v19 = vadd.f32 %v2271_v58, %v5023_v52  ;;  %v2080_v59 = vpop.f32.mrb[118].mxu1  ;;  %v2273_v60 = vpop.f32.mrb[118].mxu0  ;;  %2881 = vmatprep.mubr.bf16.mxu1 %v2475_v53  ;;  %3042 = vmatprep.mubr.bf16.mxu0 %v2477_v54 }
 0x430   : > { %v2081_v61 = vadd.f32 %v2080_v59, %v5015_v46  ;;  %v2274_v62 = vadd.f32 %v2273_v60, %v5017_v49  ;;  %v2082_v37 = vpop.f32.mrb[119].mxu1  ;;  %v2275_v63 = vpop.f32.mrb[119].mxu0  ;;  %2882 = vmatmul.mubr.bf16.gmra.mrb[176].mxu1 %v2474_v39  ;;  %3043 = vmatmul.mubr.bf16.gmra.mrb[176].mxu0 %v2476_v35  ;;  %v2402_v2 = vmax.f32 %v2077_v57, 0.0  ;;  %v2404_v24 = vmax.f32 %v2270_v17, 0.0 }
 0x431   : > { %v2083_v0 = vadd.f32 %v2082_v37, %v5021_v51  ;;  %v2276_v1 = vadd.f32 %v2275_v63, %v5023_v52  ;;  %v2403_v5 = vmax.f32 %v2079_v16, 0.0  ;;  %v2405_v6 = vmax.f32 %v2272_v19, 0.0 }
 0x432   : > { %v2406_v3 = vmax.f32 %v2081_v61, 0.0  ;;  %v2408_v4 = vmax.f32 %v2274_v62, 0.0 }
 0x433   : > { %v2407_v8 = vmax.f32 %v2083_v0, 0.0  ;;  %v2409_v9 = vmax.f32 %v2276_v1, 0.0 }
 0x434   : > { %v2478_v13 = vpack.c.bf16 %v2406_v3, %v2402_v2  ;;  %v2480_v14 = vpack.c.bf16 %v2408_v4, %v2404_v24 }
 0x435   : > { %v2479_v15 = vpack.c.bf16 %v2407_v8, %v2403_v5  ;;  %v2481_v18 = vpack.c.bf16 %v2409_v9, %v2405_v6  ;;  %v2086_v10 = vpop.f32.mrb[120].mxu1  ;;  %v2279_v22 = vpop.f32.mrb[120].mxu0 }
 0x436   : > { %v2087_v23 = vadd.f32 %v2086_v10, %v5015_v46  ;;  %v2280_v50 = vadd.f32 %v2279_v22, %v5017_v49  ;;  %v2088_v36 = vpop.f32.mrb[121].mxu1  ;;  %v2281_v25 = vpop.f32.mrb[121].mxu0 }
 0x437   : > { %v2089_v27 = vadd.f32 %v2088_v36, %v5021_v51  ;;  %v2282_v12 = vadd.f32 %v2281_v25, %v5023_v52  ;;  %v2090_v28 = vpop.f32.mrb[122].mxu1  ;;  %v2283_v29 = vpop.f32.mrb[122].mxu0  ;;  %2889 = vmatprep.mubr.bf16.mxu1 %v2479_v15  ;;  %3050 = vmatprep.mubr.bf16.mxu0 %v2481_v18 }
 0x438   : > { %v2091_v30 = vadd.f32 %v2090_v28, %v5015_v46  ;;  %v2284_v38 = vadd.f32 %v2283_v29, %v5017_v49  ;;  %v2092_v31 = vpop.f32.mrb[123].mxu1  ;;  %v2285_v40 = vpop.f32.mrb[123].mxu0  ;;  %2890 = vmatmul.mubr.bf16.gmra.mrb[180].mxu1 %v2478_v13  ;;  %3051 = vmatmul.mubr.bf16.gmra.mrb[180].mxu0 %v2480_v14  ;;  %v2410_v41 = vmax.f32 %v2087_v23, 0.0  ;;  %v2412_v11 = vmax.f32 %v2280_v50, 0.0 }
 0x439   : > { %v2093_v47 = vadd.f32 %v2092_v31, %v5021_v51  ;;  %v2286_v32 = vadd.f32 %v2285_v40, %v5023_v52  ;;  %v2411_v43 = vmax.f32 %v2089_v27, 0.0  ;;  %v2413_v44 = vmax.f32 %v2282_v12, 0.0 }
 0x43a   : > { %v2414_v42 = vmax.f32 %v2091_v30, 0.0  ;;  %v2416_v33 = vmax.f32 %v2284_v38, 0.0 }
 0x43b   : > { %v2415_v34 = vmax.f32 %v2093_v47, 0.0  ;;  %v2417_v45 = vmax.f32 %v2286_v32, 0.0 }
 0x43c   : > { %v2482_v48 = vpack.c.bf16 %v2414_v42, %v2410_v41  ;;  %v2484_v20 = vpack.c.bf16 %v2416_v33, %v2412_v11 }
 0x43d   : > { %v2483_v21 = vpack.c.bf16 %v2415_v34, %v2411_v43  ;;  %v2485_v7 = vpack.c.bf16 %v2417_v45, %v2413_v44  ;;  %v2096_v39 = vpop.f32.mrb[124].mxu1  ;;  %v2289_v35 = vpop.f32.mrb[124].mxu0 }
 0x43e   : > { %v2097_v53 = vadd.f32 %v2096_v39, %v5015_v46  ;;  %v2290_v54 = vadd.f32 %v2289_v35, %v5017_v49  ;;  %v2098_v55 = vpop.f32.mrb[125].mxu1  ;;  %v2291_v56 = vpop.f32.mrb[125].mxu0 }
 0x43f   : > { %v2099_v57 = vadd.f32 %v2098_v55, %v5021_v51  ;;  %v2292_v17 = vadd.f32 %v2291_v56, %v5023_v52  ;;  %v2100_v26 = vpop.f32.mrb[126].mxu1  ;;  %v2293_v58 = vpop.f32.mrb[126].mxu0  ;;  %2897 = vmatprep.mubr.bf16.mxu1 %v2483_v21  ;;  %3058 = vmatprep.mubr.bf16.mxu0 %v2485_v7 }
 0x440   : > { %v2101_v16 = vadd.f32 %v2100_v26, %v5015_v46  ;;  %v2294_v19 = vadd.f32 %v2293_v58, %v5017_v49  ;;  %v2102_v59 = vpop.f32.mrb[127].mxu1  ;;  %v2295_v60 = vpop.f32.mrb[127].mxu0  ;;  %2898 = vmatmul.mubr.bf16.gmra.mrb[184].mxu1 %v2482_v48  ;;  %3059 = vmatmul.mubr.bf16.gmra.mrb[184].mxu0 %v2484_v20  ;;  %v2418_v37 = vmax.f32 %v2097_v53, 0.0  ;;  %v2420_v63 = vmax.f32 %v2290_v54, 0.0 }
 0x441   : > { %v2103_v61 = vadd.f32 %v2102_v59, %v5021_v51  ;;  %v2296_v62 = vadd.f32 %v2295_v60, %v5023_v52  ;;  %v2419_v2 = vmax.f32 %v2099_v57, 0.0  ;;  %v2421_v24 = vmax.f32 %v2292_v17, 0.0  ;;  %v5156_v52 = vld [vmem:[%s5273_s10] ss:$0 sm:$0xff] }
 0x442   : > { %v2422_v0 = vmax.f32 %v2101_v16, 0.0  ;;  %v2424_v1 = vmax.f32 %v2294_v19, 0.0 }
 0x443   : > { %v2423_v3 = vmax.f32 %v2103_v61, 0.0  ;;  %v2425_v4 = vmax.f32 %v2296_v62, 0.0 }
 0x444   : > { %v2486_v5 = vpack.c.bf16 %v2422_v0, %v2418_v37  ;;  %v2488_v46 = vpack.c.bf16 %v2424_v1, %v2420_v63 }
 0x445   : > { %v2487_v6 = vpack.c.bf16 %v2423_v3, %v2419_v2  ;;  %v2489_v49 = vpack.c.bf16 %v2425_v4, %v2421_v24 }
 0x447   : > { %2905 = vmatprep.mubr.bf16.mxu1 %v2487_v6  ;;  %3066 = vmatprep.mubr.bf16.mxu0 %v2489_v49 }
 0x448   : > { %2906 = vmatmul.mubr.bf16.gmra.mrb[188].mxu1 %v2486_v5  ;;  %3067 = vmatmul.mubr.bf16.gmra.mrb[188].mxu0 %v2488_v46 }
 0x4a3   : > { %v3732_v51 = vpop.f32.mrb[128].mxu1  ;;  %v3844_v8 = vpop.f32.mrb[128].mxu0 }
 0x4a4   : > { %v3733_v9 = vpop.f32.mrb[129].mxu1  ;;  %v3845_v13 = vpop.f32.mrb[129].mxu0 }
 0x4a5   : > { %v3734_v14 = vadd.f32 %v3733_v9, %v3732_v51  ;;  %v3846_v15 = vadd.f32 %v3845_v13, %v3844_v8  ;;  %v3735_v18 = vpop.f32.mrb[130].mxu1  ;;  %v3847_v10 = vpop.f32.mrb[130].mxu0 }
 0x4a6   : > { %v3736_v22 = vpop.f32.mrb[131].mxu1  ;;  %v3848_v23 = vpop.f32.mrb[131].mxu0 }
 0x4a7   : > { %v2788_v50 = vadd.f32 %v3734_v14, %v5156_v52  ;;  %v3737_v36 = vadd.f32 %v3736_v22, %v3735_v18  ;;  %v3849_v25 = vadd.f32 %v3848_v23, %v3847_v10 }
 0x4a9   : > { %v2949_v27 = vadd.f32 %v3846_v15, %v2788_v50  ;;  %v2791_v12 = vadd.f32 %v3737_v36, %v5156_v52 }
 0x4ab   : > { %v2952_v28 = vadd.f32 %v3849_v25, %v2791_v12  ;;  %v3738_v29 = vpop.f32.mrb[132].mxu1  ;;  %v3850_v30 = vpop.f32.mrb[132].mxu0 }
 0x4ac   : > { %v3739_v38 = vpop.f32.mrb[133].mxu1  ;;  %v3851_v31 = vpop.f32.mrb[133].mxu0 }
 0x4ad   : > { %v3586_v40 = vpack.c.bf16 %v2952_v28, %v2949_v27  ;;  %v3740_v47 = vadd.f32 %v3739_v38, %v3738_v29  ;;  %v3852_v32 = vadd.f32 %v3851_v31, %v3850_v30  ;;  %v3741_v41 = vpop.f32.mrb[134].mxu1  ;;  %v3853_v11 = vpop.f32.mrb[134].mxu0 }
 0x4ae   : > { %v3742_v42 = vpop.f32.mrb[135].mxu1  ;;  %v3854_v33 = vpop.f32.mrb[135].mxu0 }
 0x4af   : > { %3587 = vst [vmem:[%s5163_s29] sm:$0xff] %v3586_v40   ;;  %v2796_v43 = vadd.f32 %v3740_v47, %v5156_v52  ;;  %v3743_v44 = vadd.f32 %v3742_v42, %v3741_v41  ;;  %v3855_v34 = vadd.f32 %v3854_v33, %v3853_v11 }
 0x4b1   : > { %v2957_v45 = vadd.f32 %v3852_v32, %v2796_v43  ;;  %v2799_v48 = vadd.f32 %v3743_v44, %v5156_v52 }
 0x4b3   : > { %v2960_v20 = vadd.f32 %v3855_v34, %v2799_v48  ;;  %v3744_v21 = vpop.f32.mrb[136].mxu1  ;;  %v3856_v7 = vpop.f32.mrb[136].mxu0 }
 0x4b4   : > { %v3745_v39 = vpop.f32.mrb[137].mxu1  ;;  %v3857_v35 = vpop.f32.mrb[137].mxu0 }
 0x4b5   : > { %v3591_v53 = vpack.c.bf16 %v2960_v20, %v2957_v45  ;;  %v3746_v54 = vadd.f32 %v3745_v39, %v3744_v21  ;;  %v3858_v55 = vadd.f32 %v3857_v35, %v3856_v7  ;;  %v3747_v56 = vpop.f32.mrb[138].mxu1  ;;  %v3859_v57 = vpop.f32.mrb[138].mxu0 }
 0x4b6   : > { %v3748_v17 = vpop.f32.mrb[139].mxu1  ;;  %v3860_v26 = vpop.f32.mrb[139].mxu0 }
 0x4b7   : > { %3663 = vst [vmem:[%s5163_s29 + $0x8] sm:$0xff] %v3591_v53   ;;  %v2804_v58 = vadd.f32 %v3746_v54, %v5156_v52  ;;  %v3749_v16 = vadd.f32 %v3748_v17, %v3747_v56  ;;  %v3861_v19 = vadd.f32 %v3860_v26, %v3859_v57 }
 0x4b9   : > { %v2965_v59 = vadd.f32 %v3858_v55, %v2804_v58  ;;  %v2807_v60 = vadd.f32 %v3749_v16, %v5156_v52 }
 0x4bb   : > { %v2968_v61 = vadd.f32 %v3861_v19, %v2807_v60  ;;  %v3750_v62 = vpop.f32.mrb[140].mxu1  ;;  %v3862_v37 = vpop.f32.mrb[140].mxu0 }
 0x4bc   : > { %v3751_v63 = vpop.f32.mrb[141].mxu1  ;;  %v3863_v0 = vpop.f32.mrb[141].mxu0 }
 0x4bd   : > { %v3596_v1 = vpack.c.bf16 %v2968_v61, %v2965_v59  ;;  %v3752_v2 = vadd.f32 %v3751_v63, %v3750_v62  ;;  %v3864_v24 = vadd.f32 %v3863_v0, %v3862_v37  ;;  %v3753_v3 = vpop.f32.mrb[142].mxu1  ;;  %v3865_v4 = vpop.f32.mrb[142].mxu0 }
 0x4be   : > { %v3754_v5 = vpop.f32.mrb[143].mxu1  ;;  %v3866_v46 = vpop.f32.mrb[143].mxu0 }
 0x4bf   : > { %3664 = vst [vmem:[%s5163_s29 + $0x10] sm:$0xff] %v3596_v1   ;;  %v2812_v6 = vadd.f32 %v3752_v2, %v5156_v52  ;;  %v3755_v49 = vadd.f32 %v3754_v5, %v3753_v3  ;;  %v3867_v51 = vadd.f32 %v3866_v46, %v3865_v4 }
 0x4c1   : > { %v2973_v8 = vadd.f32 %v3864_v24, %v2812_v6  ;;  %v2815_v9 = vadd.f32 %v3755_v49, %v5156_v52 }
 0x4c3   : > { %v2976_v13 = vadd.f32 %v3867_v51, %v2815_v9  ;;  %v3756_v14 = vpop.f32.mrb[144].mxu1  ;;  %v3868_v15 = vpop.f32.mrb[144].mxu0 }
 0x4c4   : > { %v3757_v18 = vpop.f32.mrb[145].mxu1  ;;  %v3869_v10 = vpop.f32.mrb[145].mxu0 }
 0x4c5   : > { %v3601_v22 = vpack.c.bf16 %v2976_v13, %v2973_v8  ;;  %v3758_v23 = vadd.f32 %v3757_v18, %v3756_v14  ;;  %v3870_v50 = vadd.f32 %v3869_v10, %v3868_v15  ;;  %v3759_v36 = vpop.f32.mrb[146].mxu1  ;;  %v3871_v25 = vpop.f32.mrb[146].mxu0 }
 0x4c6   : > { %v3760_v27 = vpop.f32.mrb[147].mxu1  ;;  %v3872_v12 = vpop.f32.mrb[147].mxu0 }
 0x4c7   : > { %3665 = vst [vmem:[%s5163_s29 + $0x18] sm:$0xff] %v3601_v22   ;;  %v2820_v28 = vadd.f32 %v3758_v23, %v5156_v52  ;;  %v3761_v29 = vadd.f32 %v3760_v27, %v3759_v36  ;;  %v3873_v30 = vadd.f32 %v3872_v12, %v3871_v25 }
 0x4c9   : > { %v2981_v38 = vadd.f32 %v3870_v50, %v2820_v28  ;;  %v2823_v31 = vadd.f32 %v3761_v29, %v5156_v52 }
 0x4cb   : > { %v2984_v40 = vadd.f32 %v3873_v30, %v2823_v31  ;;  %v3762_v47 = vpop.f32.mrb[148].mxu1  ;;  %v3874_v32 = vpop.f32.mrb[148].mxu0 }
 0x4cc   : > { %v3763_v41 = vpop.f32.mrb[149].mxu1  ;;  %v3875_v11 = vpop.f32.mrb[149].mxu0 }
 0x4cd   : > { %v3606_v42 = vpack.c.bf16 %v2984_v40, %v2981_v38  ;;  %v3764_v33 = vadd.f32 %v3763_v41, %v3762_v47  ;;  %v3876_v43 = vadd.f32 %v3875_v11, %v3874_v32  ;;  %v3765_v44 = vpop.f32.mrb[150].mxu1  ;;  %v3877_v34 = vpop.f32.mrb[150].mxu0 }
 0x4ce   : > { %v3766_v45 = vpop.f32.mrb[151].mxu1  ;;  %v3878_v48 = vpop.f32.mrb[151].mxu0 }
 0x4cf   : > { %3666 = vst [vmem:[%s5163_s29 + $0x20] sm:$0xff] %v3606_v42   ;;  %v2828_v20 = vadd.f32 %v3764_v33, %v5156_v52  ;;  %v3767_v21 = vadd.f32 %v3766_v45, %v3765_v44  ;;  %v3879_v7 = vadd.f32 %v3878_v48, %v3877_v34 }
 0x4d1   : > { %v2989_v39 = vadd.f32 %v3876_v43, %v2828_v20  ;;  %v2831_v35 = vadd.f32 %v3767_v21, %v5156_v52 }
 0x4d3   : > { %v2992_v53 = vadd.f32 %v3879_v7, %v2831_v35  ;;  %v3768_v54 = vpop.f32.mrb[152].mxu1  ;;  %v3880_v55 = vpop.f32.mrb[152].mxu0 }
 0x4d4   : > { %v3769_v56 = vpop.f32.mrb[153].mxu1  ;;  %v3881_v57 = vpop.f32.mrb[153].mxu0 }
 0x4d5   : > { %v3611_v17 = vpack.c.bf16 %v2992_v53, %v2989_v39  ;;  %v3770_v26 = vadd.f32 %v3769_v56, %v3768_v54  ;;  %v3882_v58 = vadd.f32 %v3881_v57, %v3880_v55  ;;  %v3771_v16 = vpop.f32.mrb[154].mxu1  ;;  %v3883_v19 = vpop.f32.mrb[154].mxu0 }
 0x4d6   : > { %v3772_v59 = vpop.f32.mrb[155].mxu1  ;;  %v3884_v60 = vpop.f32.mrb[155].mxu0 }
 0x4d7   : > { %3667 = vst [vmem:[%s5163_s29 + $0x28] sm:$0xff] %v3611_v17   ;;  %v2836_v61 = vadd.f32 %v3770_v26, %v5156_v52  ;;  %v3773_v62 = vadd.f32 %v3772_v59, %v3771_v16  ;;  %v3885_v37 = vadd.f32 %v3884_v60, %v3883_v19 }
 0x4d9   : > { %v2997_v63 = vadd.f32 %v3882_v58, %v2836_v61  ;;  %v2839_v0 = vadd.f32 %v3773_v62, %v5156_v52 }
 0x4db   : > { %v3000_v1 = vadd.f32 %v3885_v37, %v2839_v0  ;;  %v3774_v2 = vpop.f32.mrb[156].mxu1  ;;  %v3886_v24 = vpop.f32.mrb[156].mxu0 }
 0x4dc   : > { %v3775_v3 = vpop.f32.mrb[157].mxu1  ;;  %v3887_v4 = vpop.f32.mrb[157].mxu0 }
 0x4dd   : > { %v3616_v5 = vpack.c.bf16 %v3000_v1, %v2997_v63  ;;  %v3776_v46 = vadd.f32 %v3775_v3, %v3774_v2  ;;  %v3888_v6 = vadd.f32 %v3887_v4, %v3886_v24  ;;  %v3777_v49 = vpop.f32.mrb[158].mxu1  ;;  %v3889_v51 = vpop.f32.mrb[158].mxu0 }
 0x4de   : > { %v3778_v8 = vpop.f32.mrb[159].mxu1  ;;  %v3890_v9 = vpop.f32.mrb[159].mxu0 }
 0x4df   : > { %3668 = vst [vmem:[%s5163_s29 + $0x30] sm:$0xff] %v3616_v5   ;;  %v2844_v13 = vadd.f32 %v3776_v46, %v5156_v52  ;;  %v3779_v14 = vadd.f32 %v3778_v8, %v3777_v49  ;;  %v3891_v15 = vadd.f32 %v3890_v9, %v3889_v51 }
 0x4e1   : > { %v3005_v18 = vadd.f32 %v3888_v6, %v2844_v13  ;;  %v2847_v10 = vadd.f32 %v3779_v14, %v5156_v52 }
 0x4e3   : > { %v3008_v22 = vadd.f32 %v3891_v15, %v2847_v10  ;;  %v3780_v23 = vpop.f32.mrb[160].mxu1  ;;  %v3892_v50 = vpop.f32.mrb[160].mxu0 }
 0x4e4   : > { %v3781_v36 = vpop.f32.mrb[161].mxu1  ;;  %v3893_v25 = vpop.f32.mrb[161].mxu0 }
 0x4e5   : > { %v3621_v27 = vpack.c.bf16 %v3008_v22, %v3005_v18  ;;  %v3782_v12 = vadd.f32 %v3781_v36, %v3780_v23  ;;  %v3894_v28 = vadd.f32 %v3893_v25, %v3892_v50  ;;  %v3783_v29 = vpop.f32.mrb[162].mxu1  ;;  %v3895_v30 = vpop.f32.mrb[162].mxu0 }
 0x4e6   : > { %v3784_v38 = vpop.f32.mrb[163].mxu1  ;;  %v3896_v31 = vpop.f32.mrb[163].mxu0 }
 0x4e7   : > { %3669 = vst [vmem:[%s5163_s29 + $0x38] sm:$0xff] %v3621_v27   ;;  %v2852_v40 = vadd.f32 %v3782_v12, %v5156_v52  ;;  %v3785_v47 = vadd.f32 %v3784_v38, %v3783_v29  ;;  %v3897_v32 = vadd.f32 %v3896_v31, %v3895_v30 }
 0x4e9   : > { %v3013_v41 = vadd.f32 %v3894_v28, %v2852_v40  ;;  %v2855_v11 = vadd.f32 %v3785_v47, %v5156_v52 }
 0x4eb   : > { %v3016_v42 = vadd.f32 %v3897_v32, %v2855_v11  ;;  %v3786_v33 = vpop.f32.mrb[164].mxu1  ;;  %v3898_v43 = vpop.f32.mrb[164].mxu0 }
 0x4ec   : > { %v3787_v44 = vpop.f32.mrb[165].mxu1  ;;  %v3899_v34 = vpop.f32.mrb[165].mxu0 }
 0x4ed   : > { %v3626_v45 = vpack.c.bf16 %v3016_v42, %v3013_v41  ;;  %v3788_v48 = vadd.f32 %v3787_v44, %v3786_v33  ;;  %v3900_v20 = vadd.f32 %v3899_v34, %v3898_v43  ;;  %v3789_v21 = vpop.f32.mrb[166].mxu1  ;;  %v3901_v7 = vpop.f32.mrb[166].mxu0 }
 0x4ee   : > { %v3790_v39 = vpop.f32.mrb[167].mxu1  ;;  %v3902_v35 = vpop.f32.mrb[167].mxu0 }
 0x4ef   : > { %3670 = vst [vmem:[%s5163_s29 + $0x40] sm:$0xff] %v3626_v45   ;;  %v2860_v53 = vadd.f32 %v3788_v48, %v5156_v52  ;;  %v3791_v54 = vadd.f32 %v3790_v39, %v3789_v21  ;;  %v3903_v55 = vadd.f32 %v3902_v35, %v3901_v7 }
 0x4f1   : > { %v3021_v56 = vadd.f32 %v3900_v20, %v2860_v53  ;;  %v2863_v57 = vadd.f32 %v3791_v54, %v5156_v52 }
 0x4f3   : > { %v3024_v17 = vadd.f32 %v3903_v55, %v2863_v57  ;;  %v3792_v26 = vpop.f32.mrb[168].mxu1  ;;  %v3904_v58 = vpop.f32.mrb[168].mxu0 }
 0x4f4   : > { %v3793_v16 = vpop.f32.mrb[169].mxu1  ;;  %v3905_v19 = vpop.f32.mrb[169].mxu0 }
 0x4f5   : > { %v3631_v59 = vpack.c.bf16 %v3024_v17, %v3021_v56  ;;  %v3794_v60 = vadd.f32 %v3793_v16, %v3792_v26  ;;  %v3906_v61 = vadd.f32 %v3905_v19, %v3904_v58  ;;  %v3795_v62 = vpop.f32.mrb[170].mxu1  ;;  %v3907_v37 = vpop.f32.mrb[170].mxu0 }
 0x4f6   : > { %v3796_v63 = vpop.f32.mrb[171].mxu1  ;;  %v3908_v0 = vpop.f32.mrb[171].mxu0 }
 0x4f7   : > { %3671 = vst [vmem:[%s5163_s29 + $0x48] sm:$0xff] %v3631_v59   ;;  %v2868_v1 = vadd.f32 %v3794_v60, %v5156_v52  ;;  %v3797_v2 = vadd.f32 %v3796_v63, %v3795_v62  ;;  %v3909_v24 = vadd.f32 %v3908_v0, %v3907_v37 }
 0x4f9   : > { %v3029_v3 = vadd.f32 %v3906_v61, %v2868_v1  ;;  %v2871_v4 = vadd.f32 %v3797_v2, %v5156_v52 }
 0x4fb   : > { %v3032_v5 = vadd.f32 %v3909_v24, %v2871_v4  ;;  %v3798_v46 = vpop.f32.mrb[172].mxu1  ;;  %v3910_v6 = vpop.f32.mrb[172].mxu0 }
 0x4fc   : > { %v3799_v49 = vpop.f32.mrb[173].mxu1  ;;  %v3911_v51 = vpop.f32.mrb[173].mxu0 }
 0x4fd   : > { %v3636_v8 = vpack.c.bf16 %v3032_v5, %v3029_v3  ;;  %v3800_v9 = vadd.f32 %v3799_v49, %v3798_v46  ;;  %v3912_v13 = vadd.f32 %v3911_v51, %v3910_v6  ;;  %v3801_v14 = vpop.f32.mrb[174].mxu1  ;;  %v3913_v15 = vpop.f32.mrb[174].mxu0 }
 0x4fe   : > { %v3802_v18 = vpop.f32.mrb[175].mxu1  ;;  %v3914_v10 = vpop.f32.mrb[175].mxu0 }
 0x4ff   : > { %3672 = vst [vmem:[%s5163_s29 + $0x50] sm:$0xff] %v3636_v8   ;;  %v2876_v22 = vadd.f32 %v3800_v9, %v5156_v52  ;;  %v3803_v23 = vadd.f32 %v3802_v18, %v3801_v14  ;;  %v3915_v50 = vadd.f32 %v3914_v10, %v3913_v15 }
 0x501   : > { %v3037_v36 = vadd.f32 %v3912_v13, %v2876_v22  ;;  %v2879_v25 = vadd.f32 %v3803_v23, %v5156_v52 }
 0x503   : > { %v3040_v27 = vadd.f32 %v3915_v50, %v2879_v25  ;;  %v3804_v12 = vpop.f32.mrb[176].mxu1  ;;  %v3916_v28 = vpop.f32.mrb[176].mxu0 }
 0x504   : > { %v3805_v29 = vpop.f32.mrb[177].mxu1  ;;  %v3917_v30 = vpop.f32.mrb[177].mxu0 }
 0x505   : > { %v3641_v38 = vpack.c.bf16 %v3040_v27, %v3037_v36  ;;  %v3806_v31 = vadd.f32 %v3805_v29, %v3804_v12  ;;  %v3918_v40 = vadd.f32 %v3917_v30, %v3916_v28  ;;  %v3807_v47 = vpop.f32.mrb[178].mxu1  ;;  %v3919_v32 = vpop.f32.mrb[178].mxu0 }
 0x506   : > { %v3808_v41 = vpop.f32.mrb[179].mxu1  ;;  %v3920_v11 = vpop.f32.mrb[179].mxu0 }
 0x507   : > { %3673 = vst [vmem:[%s5163_s29 + $0x58] sm:$0xff] %v3641_v38   ;;  %v2884_v42 = vadd.f32 %v3806_v31, %v5156_v52  ;;  %v3809_v33 = vadd.f32 %v3808_v41, %v3807_v47  ;;  %v3921_v43 = vadd.f32 %v3920_v11, %v3919_v32 }
 0x509   : > { %v3045_v44 = vadd.f32 %v3918_v40, %v2884_v42  ;;  %v2887_v34 = vadd.f32 %v3809_v33, %v5156_v52 }
 0x50b   : > { %v3048_v45 = vadd.f32 %v3921_v43, %v2887_v34  ;;  %v3810_v48 = vpop.f32.mrb[180].mxu1  ;;  %v3922_v20 = vpop.f32.mrb[180].mxu0 }
 0x50c   : > { %v3811_v21 = vpop.f32.mrb[181].mxu1  ;;  %v3923_v7 = vpop.f32.mrb[181].mxu0 }
 0x50d   : > { %v3646_v39 = vpack.c.bf16 %v3048_v45, %v3045_v44  ;;  %v3812_v35 = vadd.f32 %v3811_v21, %v3810_v48  ;;  %v3924_v53 = vadd.f32 %v3923_v7, %v3922_v20  ;;  %v3813_v54 = vpop.f32.mrb[182].mxu1  ;;  %v3925_v55 = vpop.f32.mrb[182].mxu0 }
 0x50e   : > { %v3814_v56 = vpop.f32.mrb[183].mxu1  ;;  %v3926_v57 = vpop.f32.mrb[183].mxu0 }
 0x50f   : > { %3674 = vst [vmem:[%s5163_s29 + $0x60] sm:$0xff] %v3646_v39   ;;  %v2892_v17 = vadd.f32 %v3812_v35, %v5156_v52  ;;  %v3815_v26 = vadd.f32 %v3814_v56, %v3813_v54  ;;  %v3927_v58 = vadd.f32 %v3926_v57, %v3925_v55 }
 0x511   : > { %v3053_v16 = vadd.f32 %v3924_v53, %v2892_v17  ;;  %v2895_v19 = vadd.f32 %v3815_v26, %v5156_v52 }
 0x513   : > { %v3056_v59 = vadd.f32 %v3927_v58, %v2895_v19  ;;  %v3816_v60 = vpop.f32.mrb[184].mxu1  ;;  %v3928_v61 = vpop.f32.mrb[184].mxu0 }
 0x514   : > { %v3817_v62 = vpop.f32.mrb[185].mxu1  ;;  %v3929_v37 = vpop.f32.mrb[185].mxu0 }
 0x515   : > { %v3651_v63 = vpack.c.bf16 %v3056_v59, %v3053_v16  ;;  %v3818_v0 = vadd.f32 %v3817_v62, %v3816_v60  ;;  %v3930_v1 = vadd.f32 %v3929_v37, %v3928_v61  ;;  %v3819_v2 = vpop.f32.mrb[186].mxu1  ;;  %v3931_v24 = vpop.f32.mrb[186].mxu0 }
 0x516   : > { %v3820_v3 = vpop.f32.mrb[187].mxu1  ;;  %v3932_v4 = vpop.f32.mrb[187].mxu0 }
 0x517   : > { %3675 = vst [vmem:[%s5163_s29 + $0x68] sm:$0xff] %v3651_v63   ;;  %v2900_v5 = vadd.f32 %v3818_v0, %v5156_v52  ;;  %v3821_v46 = vadd.f32 %v3820_v3, %v3819_v2  ;;  %v3933_v6 = vadd.f32 %v3932_v4, %v3931_v24 }
 0x519   : > { %v3061_v49 = vadd.f32 %v3930_v1, %v2900_v5  ;;  %v2903_v51 = vadd.f32 %v3821_v46, %v5156_v52 }
 0x51b   : > { %v3064_v8 = vadd.f32 %v3933_v6, %v2903_v51  ;;  %v3822_v9 = vpop.f32.mrb[188].mxu1  ;;  %v3934_v13 = vpop.f32.mrb[188].mxu0 }
 0x51c   : > { %v3823_v14 = vpop.f32.mrb[189].mxu1  ;;  %v3935_v15 = vpop.f32.mrb[189].mxu0 }
 0x51d   : > { %v3656_v18 = vpack.c.bf16 %v3064_v8, %v3061_v49  ;;  %v3824_v10 = vadd.f32 %v3823_v14, %v3822_v9  ;;  %v3936_v22 = vadd.f32 %v3935_v15, %v3934_v13  ;;  %v3825_v23 = vpop.f32.mrb[190].mxu1  ;;  %v3937_v50 = vpop.f32.mrb[190].mxu0 }
 0x51e   : > { %v3826_v36 = vpop.f32.mrb[191].mxu1  ;;  %v3938_v25 = vpop.f32.mrb[191].mxu0 }
 0x51f   : > { %3676 = vst [vmem:[%s5163_s29 + $0x70] sm:$0xff] %v3656_v18   ;;  %v2908_v27 = vadd.f32 %v3824_v10, %v5156_v52  ;;  %v3827_v12 = vadd.f32 %v3826_v36, %v3825_v23  ;;  %v3939_v28 = vadd.f32 %v3938_v25, %v3937_v50 }
 0x521   : > { %v3069_v29 = vadd.f32 %v3936_v22, %v2908_v27  ;;  %v2911_v30 = vadd.f32 %v3827_v12, %v5156_v52 }
 0x523   : > { %v3072_v38 = vadd.f32 %v3939_v28, %v2911_v30 }
 0x525   : > { %v3661_v31 = vpack.c.bf16 %v3072_v38, %v3069_v29 }
 0x527   : > { %3677 = vst [vmem:[%s5163_s29 + $0x78] sm:$0xff] %v3661_v31  }
 0x528   : > { %4342 = shalt.err (!%p4339_p11)
}
 0x529   : > { %s4343_s28 = scalar_lea.hbm %s5215_s30, 2048  ;;  %s4347_s15 = scalar_lea.hbm %s5274_s11, 4096 }
 0x52a   : > { %p4344_p13 = scmp.ne.s32.totalorder %s5215_s30, %s4343_s28  ;;  %p4348_p6 = scmp.lt.u32.totalorder %s5215_s30, %s5274_s11 }
 0x52b   : > { %p4349_p9 = scmp.lt.u32.totalorder %s4347_s15, %s4343_s28  ;;  %p4351_p12 = scmp.lt.u32.totalorder %s4343_s28, %s5215_s30 }
 0x52c   : > { %p4345_p0 = pnand %p4344_p13, %p5297_p1 }
 0x52d   : > { %p4350_p10 = por %p4349_p9, %p4348_p6 }
 0x52e   : > { %p4346_p5 = pneg %p4345_p0 }
 0x52f   : > { %p4352_p2 = por %p4351_p12, %p4350_p10 }
 0x531   : > { %p4353_p3 = pnand %p4352_p2, %p4346_p5 }
 0x533   : > { %4356 = shalt.err (!%p4353_p3)
}
 0x534   : > { %s4409_s19 = smov 64   ;;  %s4410_s24 = smov 4  }
 0x535   : > { %4040 = dma.vmem_to_hbm [thread:$0]  (%p5297_p1), %s5217_s26, 2048, %s5215_s30, %s5222_s14, %s4409_s19, %s4409_s19, %s4410_s24  }
 0x536 PF: > { %s5298_s25 = sld [smem:[#allocation11_spill]]  ;;  %s5299_s12 = sld [smem:[#allocation15_spill]] }
 0x537   : > { %p4057_p4 = scmp.ge.s32.totalorder %s4399_s20, 2 }
 0x53c   : > { %s3264_s21 = sand.u32 1, %s5298_s25   ;;  %p5300_p7 = scmp.ne.s32.totalorder %s5299_s12, 0 }
 0x53d   : > { %s3265_s17 = scalar_lea.sflag [#allocation4], %s3264_s21 }
 0x53e   : > { %p4050_p8 = pnand %p4057_p4, %p5300_p7 }
 0x540   : > { %4382 = dma.done.wait (!%p4050_p8), %s3265_s17, 2048  }
 0x541   : > { %4384 = vsyncadd (!%p4050_p8), %s3265_s17, 4294965248  ;;  %s5301_s20 = sld [smem:[#allocation13_spill]]  ;;  %s5302_s23 = sld [smem:[#allocation12_spill]] }
 0x542   : > { %s5303_s19 = sld [smem:[#allocation14_spill]]  ;;  %s5304_s17 = smov %s4391_s18 }
 0x547   : > { %p23_p11 = scmp.ge.s32.totalorder %s5301_s20, 4   ;;  %s5305_s18 = smov %s5302_s23 }
 0x549   :  { %25 = sbr.rel (!%p23_p11) target bundleno = 5 (0x5), region = 108 }
 0x550   :  { %3270 = vsyncpa [#allocation3], 1 }
 0x551   :  { %3272 = vsyncpa [#allocation3 + $0x1], 1 }
 0x552   :  { %3273 = vsyncpa [#allocation6], 1 }
 0x553   :  { %3274 = vsyncpa [#allocation4], 1 }
 0x554   :  { %3276 = vsyncpa [#allocation4 + $0x1], 1 }

</bundles_post_ra>
